<compile_context>
chip_gen: v7x
topology: tpu7x:2x2x1
jax: 0.10.0
libtpu: 0.0.40
codegen_flags: <defaults>
</compile_context>

<pallas_src>
import functools

import numpy as np
import jax
import jax.numpy as jnp
from jax.experimental import pallas as pl
from jax.experimental.pallas import tpu as pltpu

# ---------------- deterministic in-script stand-in for `configer` -----------
N_DATASETS = 2
NUM_UNIFY_CLASSES = 8          # must fit an int32 bitmask (<= 31)
NUM_LOCAL_CLASSES = 6          # classes per source dataset
NETWORK_STRIDE = 2
WITH_AUX = True
AUX_NUM = 1
AUX_WEIGHT = 0.4
WITH_DOMAIN_ADV = True
DOMAIN_LOSS_WEIGHT = 0.1
IGNORE_INDEX = -1
USE_CONTRAST = False           # -> forward() takes the warmup/no-contrast branch


# ---------------------------------------------------------------------------
# deterministic class remap table (stand-in for classRemapper.SegRemapping):
# local class l of dataset d -> multi-hot over the unified label space.
def _build_remap_table():
    t = np.zeros((N_DATASETS * NUM_LOCAL_CLASSES, NUM_UNIFY_CLASSES), np.float32)
    for d in range(N_DATASETS):
        for l in range(NUM_LOCAL_CLASSES):
            t[d * NUM_LOCAL_CLASSES + l,
              (d * NUM_LOCAL_CLASSES + l) % NUM_UNIFY_CLASSES] = 1.0
            if d == 1:  # make some remaps genuinely multi-hot
                t[d * NUM_LOCAL_CLASSES + l, l % NUM_UNIFY_CLASSES] = 1.0
    return t


def _remap_to_codes(remap_table):
    """(D*L, C) {0,1} table -> (D*L,) int32 bitmask of unified target classes."""
    dl, c = remap_table.shape
    assert c <= 31, "unified class count must fit an int32 bitmask"
    # TODO(synk): for > 31 unified classes, split the code into two int32 planes.
    weights = (1 << np.arange(c, dtype=np.int64))
    codes = (remap_table.astype(np.float64) > 0.5).astype(np.int64) @ weights
    return codes.astype(np.int32)


def _interp_matrix(out_size, in_size):
    """Row-interpolation matrix for bilinear resize with align_corners=True."""
    m = np.zeros((out_size, in_size), np.float32)
    if in_size == 1 or out_size == 1:
        m[:, 0] = 1.0
        return m
    src = np.arange(out_size, dtype=np.float64) * (in_size - 1) / (out_size - 1)
    i0 = np.floor(src).astype(np.int64)
    i1 = np.minimum(i0 + 1, in_size - 1)
    frac = (src - i0).astype(np.float32)
    for j in range(out_size):
        m[j, i0[j]] += 1.0 - frac[j]
        m[j, i1[j]] += frac[j]
    return m


# ---------------------------------------------------------------------------
# VMEM budgeting.
def _vmem_limit_bytes():
    """Scoped VMEM limit to request: ~3/4 of physical, capped at 96 MiB
    (v5e/v6e: 128 MiB physical -> 96 MiB; v7x: 64 MiB physical -> 48 MiB)."""
    try:
        cap = int(pltpu.get_tpu_info().vmem_capacity_bytes)
    except Exception:
        cap = 64 << 20
    return min((cap * 3) // 4, 96 << 20)


def _pick_tile_rows(h, per_row_bytes, fixed_bytes, budget_bytes):
    """Largest sublane-multiple row tile whose honest VMEM footprint
    (double-buffered inputs + in-kernel temporaries + resident buffers)
    fits the budget.  Partial last tiles are handled by in-kernel masking."""
    if h <= 8:
        return h
    avail = budget_bytes - fixed_bytes
    th = int(avail // max(per_row_bytes, 1))
    th = min(th, h)
    if th >= h:
        return h
    return max((th // 8) * 8, 8)


# ---------------------------------------------------------------------------
# Fused kernel: main-head multi-positive softmax CE + (optional) aux heads
# (bilinear align_corners=True upsample done on the MXU, CE folded into an
# online softmax so the upsampled planes never accumulate in VMEM).
#
# ref layout: [logits] + [aux_i, r_i, ct_i]*n_aux + [codes]
#             -> [seg_loss] + [aux_loss_i]*n_aux + [valid_count]
def _ce_fused_kernel(*refs, n_chan, n_aux, th, h_total, tiles_per_half,
                     needs_row_mask):
    logits_ref = refs[0]
    aux_refs = [refs[1 + 3 * i] for i in range(n_aux)]
    r_refs = [refs[2 + 3 * i] for i in range(n_aux)]
    ct_refs = [refs[3 + 3 * i] for i in range(n_aux)]
    code_ref = refs[1 + 3 * n_aux]
    segl_ref = refs[2 + 3 * n_aux]
    auxl_refs = [refs[3 + 3 * n_aux + i] for i in range(n_aux)]
    valid_ref = refs[3 + 4 * n_aux]

    hi = pl.program_id(1)
    ti = pl.program_id(2)

    code = code_ref[0]                                    # (TH, W) int32
    valid = code != 0
    if needs_row_mask:
        # cdiv padding: rows past the end of the image are masked out.
        row0 = (hi * tiles_per_half + ti) * th
        rows = jax.lax.broadcasted_iota(jnp.int32, code.shape, 0)
        valid = jnp.logical_and(valid, (row0 + rows) < h_total)

    # ---- main head: two-pass softmax CE, re-reading the VMEM block per
    # channel instead of holding C live f32 planes.
    m = logits_ref[0, 0].astype(jnp.float32)
    for ch in range(1, n_chan):
        m = jnp.maximum(m, logits_ref[0, ch].astype(jnp.float32))
    z = jnp.zeros_like(m)
    s = jnp.zeros_like(m)
    for ch in range(n_chan):
        e = jnp.exp(logits_ref[0, ch].astype(jnp.float32) - m)
        z = z + e
        s = s + jnp.where((code & (1 << ch)) != 0, e, 0.0)
    seg_loss = jnp.where(valid, jnp.log(z) - jnp.log(jnp.maximum(s, 1e-30)), 0.0)

    # ---- aux heads: per-channel R @ X @ C^T (bf16 MXU) + online softmax CE.
    aux_losses = []
    for a in range(n_aux):
        r = r_refs[a][...]                                # (TH, ha)  bf16
        ct = ct_refs[a][...]                              # (wa, W)   bf16

        def upsample(ch, _r=r, _ct=ct, _aux=aux_refs[a]):
            rows_lr = jnp.dot(_r, _aux[0, ch].astype(jnp.bfloat16),
                              preferred_element_type=jnp.float32)     # (TH, wa)
            return jnp.dot(rows_lr.astype(jnp.bfloat16), _ct,
                           preferred_element_type=jnp.float32)        # (TH, W)

        am = upsample(0)
        az = jnp.ones_like(am)
        asum = jnp.where((code & 1) != 0, az, 0.0)
        for ch in range(1, n_chan):
            xc = upsample(ch)
            mn = jnp.maximum(am, xc)
            scale = jnp.exp(am - mn)
            e = jnp.exp(xc - mn)
            az = az * scale + e
            asum = asum * scale + jnp.where((code & (1 << ch)) != 0, e, 0.0)
            am = mn
        aux_losses.append(
            jnp.where(valid, jnp.log(az) - jnp.log(jnp.maximum(asum, 1e-30)), 0.0))

    # ---- lane-dense (1, 1, W) accumulators, resident across the inner
    # 'arbitrary' row-tile axis: zero at step 0, add every step.
    @pl.when(ti == 0)
    def _():
        segl_ref[...] = jnp.zeros_like(segl_ref)
        valid_ref[...] = jnp.zeros_like(valid_ref)
        for a in range(n_aux):
            auxl_refs[a][...] = jnp.zeros_like(auxl_refs[a])

    segl_ref[0] = segl_ref[0] + jnp.sum(seg_loss, axis=0, keepdims=True)
    valid_ref[0] = valid_ref[0] + jnp.sum(valid.astype(jnp.float32),
                                          axis=0, keepdims=True)
    for a in range(n_aux):
        auxl_refs[a][0] = auxl_refs[a][0] + jnp.sum(aux_losses[a], axis=0,
                                                    keepdims=True)


def fused_seg_aux_ce(logits_nchw, aux_list, codes_bhw):
    """logits: (B, C, H, W) float; aux_list: list of (B, C, ha, wa) float;
       codes: (B, H, W) int32 bitmasks.  Returns (loss_seg, [loss_aux...])."""
    b, c, h, w = logits_nchw.shape
    n_aux = len(aux_list)
    logit_isz = jnp.dtype(logits_nchw.dtype).itemsize

    # --- honest VMEM accounting ------------------------------------------
    # per-row bytes: logits block x2 buffers, codes block x2, ~12 f32 temps.
    per_row = w * (2 * c * logit_isz + 2 * 4 + 12 * 4)
    fixed = 0
    aux_inputs = []
    for aux in aux_list:
        _, ca, ha, wa = aux.shape
        assert ca == c
        r_mat = jnp.asarray(_interp_matrix(h, ha), jnp.bfloat16)        # (H, ha)
        ct_mat = jnp.asarray(_interp_matrix(w, wa).T, jnp.bfloat16)     # (wa, W)
        fixed += 2 * (c * ha * wa * jnp.dtype(aux.dtype).itemsize        # aux img
                      + wa * w * 2)                                      # ct bf16
        per_row += 2 * ha * 2                                            # r tile
        aux_inputs.append((aux, r_mat, ct_mat, ha, wa))
    fixed += 2 * (2 + n_aux) * w * 4                                     # accums

    limit = _vmem_limit_bytes()
    th = _pick_tile_rows(h, per_row, fixed, int(limit * 0.7))

    n_row_blocks = -(-h // th)
    # H-split parallel axis so both v7x TensorCores get work at small batch.
    n_h = 2 if (n_row_blocks % 2 == 0) else 1
    tiles_per_half = n_row_blocks // n_h
    needs_row_mask = (n_row_blocks * th != h)

    in_specs = [pl.BlockSpec((1, c, th, w),
                             lambda bi, hi, ti: (bi, 0, hi * tiles_per_half + ti, 0))]
    inputs = [logits_nchw]
    for (aux, r_mat, ct_mat, ha, wa) in aux_inputs:
        in_specs += [
            # whole low-res aux image per batch: block index constant along
            # the row axes, so it is DMA'd once per image and stays resident.
            pl.BlockSpec((1, c, ha, wa), lambda bi, hi, ti: (bi, 0, 0, 0)),
            pl.BlockSpec((th, ha),
                         lambda bi, hi, ti: (hi * tiles_per_half + ti, 0)),
            pl.BlockSpec((wa, w), lambda bi, hi, ti: (0, 0)),
        ]
        inputs += [aux, r_mat, ct_mat]
    in_specs.append(pl.BlockSpec((1, th, w),
                                 lambda bi, hi, ti: (bi, hi * tiles_per_half + ti, 0)))
    inputs.append(codes_bhw)

    n_out = 2 + n_aux  # seg_loss, aux_losses..., valid_count
    out_shape = tuple(jax.ShapeDtypeStruct((b, n_h, w), jnp.float32)
                      for _ in range(n_out))
    out_specs = [pl.BlockSpec((1, 1, w), lambda bi, hi, ti: (bi, hi, 0))
                 for _ in range(n_out)]

    kernel = functools.partial(_ce_fused_kernel, n_chan=c, n_aux=n_aux, th=th,
                               h_total=h, tiles_per_half=tiles_per_half,
                               needs_row_mask=needs_row_mask)
    outs = pl.pallas_call(
        kernel,
        out_shape=out_shape,
        grid=(b, n_h, tiles_per_half),
        in_specs=in_specs,
        out_specs=out_specs,
        compiler_params=pltpu.CompilerParams(
            dimension_semantics=("parallel", "parallel", "arbitrary"),
            vmem_limit_bytes=int(limit)),
    )(*inputs)

    seg_p = outs[0]
    aux_ps = outs[1:1 + n_aux]
    valid_p = outs[1 + n_aux]
    denom = jnp.maximum(jnp.sum(valid_p), 1.0)
    loss_seg = jnp.sum(seg_p) / denom
    loss_aux = [jnp.sum(a) / denom for a in aux_ps]
    return loss_seg, loss_aux


# ---------------------------------------------------------------------------
# Host-side glue (cheap, label-tensor sized).
def build_pixel_codes(lb, dataset_ids, code_table):
    """AdaptiveSegRemapping: per-pixel int32 bitmask of unified target classes.
       lb: (B, H, W) int labels; dataset_ids: (B,); code_table: (D*L,) int32."""
    valid = lb != IGNORE_INDEX
    comb = dataset_ids[:, None, None] * NUM_LOCAL_CLASSES + jnp.where(valid, lb, 0)
    comb = jnp.clip(comb, 0, code_table.shape[0] - 1)
    codes = code_table[comb]
    return jnp.where(valid, codes, 0).astype(jnp.int32)


def weighted_cross_entropy(pred, labels, class_weight):
    """torch.nn.CrossEntropyLoss(weight=w) for the tiny (B, n_datasets) domain
    heads — plain JAX, a Pallas launch would be pure overhead."""
    logp = jax.nn.log_softmax(pred.astype(jnp.float32), axis=-1)
    picked = jnp.take_along_axis(logp, labels[:, None].astype(jnp.int32), axis=-1)[:, 0]
    w = class_weight[labels]
    return -jnp.sum(w * picked) / jnp.maximum(jnp.sum(w), 1e-12)


# ---------------------------------------------------------------------------
# CrossDatasetsLoss.forward — warmup / no-contrast path.
def cross_datasets_loss_forward(preds, target, dataset_ids, remap_table,
                                domain_class_weight, is_warmup=True):
    assert 'seg' in preds
    if WITH_AUX:
        logits, *logits_aux = preds['seg']
    else:
        logits = preds['seg']
        logits_aux = []
    if WITH_DOMAIN_ADV:
        domain_pred1, domain_pred2 = preds['domain']

    b, c, h, w = logits.shape
    lb = target                                                   # (B, H, W) int32

    # contrast_lb kept for parity with the reference; unused in this branch.
    contrast_lb = lb[:, ::NETWORK_STRIDE, ::NETWORK_STRIDE]
    del contrast_lb

    # AdaptiveSegRemapping glue: per-pixel multi-hot unified target encoded as
    # an int32 bitmask (ignore / empty remap rows -> 0).
    code_table = jnp.asarray(_remap_to_codes(np.asarray(remap_table)))
    codes = build_pixel_codes(lb, dataset_ids.astype(jnp.int32), code_table)

    # is_warmup or not use_contrast branch: one fused Pallas call computes the
    # main-head CE and every aux head's upsample+CE.
    loss_seg, loss_aux = fused_seg_aux_ce(logits, list(logits_aux), codes)
    loss = loss_seg
    if WITH_AUX:
        loss = loss + AUX_WEIGHT * sum(loss_aux)
    else:
        loss_aux = None

    loss_domain = None
    if WITH_DOMAIN_ADV:
        domain_label = (jnp.ones((b,), jnp.int32) * dataset_ids).astype(jnp.int32)
        loss_d1 = weighted_cross_entropy(domain_pred1, domain_label, domain_class_weight)
        loss_d2 = weighted_cross_entropy(domain_pred2, domain_label, domain_class_weight)
        loss_domain = loss_d1 + loss_d2
        loss = loss + DOMAIN_LOSS_WEIGHT * loss_domain

    loss_contrast = None
    kl_loss = None
    new_proto = None
    # TODO(synk): contrast / EMA / KL-consistency branch not implemented
    # (its criteria are eval()'d from the config and unavailable).
    return (loss, loss_seg, loss_aux, loss_contrast, loss_domain, kl_loss, new_proto)


# ---------------------------------------------------------------------------
if __name__ == "__main__":
    key = jax.random.PRNGKey(0)
    k1, k2, k3, k4, k5 = jax.random.split(key, 5)

    B, H, W = 2, 16, 16
    C = NUM_UNIFY_CLASSES

    logits = jax.random.normal(k1, (B, C, H, W), jnp.float32)
    logits_aux = jax.random.normal(k2, (B, C, H // 2, W // 2), jnp.float32)
    domain_pred1 = jax.random.normal(k3, (B, N_DATASETS), jnp.float32)
    domain_pred2 = jax.random.normal(k4, (B, N_DATASETS), jnp.float32)
    target = jax.random.randint(k5, (B, H, W), IGNORE_INDEX, NUM_LOCAL_CLASSES).astype(jnp.int32)
    dataset_ids = jnp.array([0, 1], jnp.int32)

    preds = {'seg': (logits, logits_aux), 'domain': (domain_pred1, domain_pred2)}

    remap_table = _build_remap_table()

    # domain class weights (F.normalize(batch_size_sum / batch_sizes, p=1))
    batch_sizes = np.array([1.0, 1.0], np.float32)
    wv = batch_sizes.sum() / batch_sizes
    domain_class_weight = jnp.asarray(wv / np.abs(wv).sum())

    outs = cross_datasets_loss_forward(preds, target, dataset_ids,
                                       remap_table, domain_class_weight,
                                       is_warmup=True)
    jax.block_until_ready(outs[0])
    assert np.isfinite(np.asarray(outs[0])).all()
    print("KERNEL_OK")
</pallas_src>

<mosaic_0001>
module attributes {stable_mosaic.version = 11 : i64} {
  func.func @_ce_fused_kernel(%arg0: i32, %arg1: i32, %arg2: i32, %arg3: memref<1x8x16x16xf32, #tpu.memory_space<vmem>>, %arg4: memref<1x8x8x8xf32, #tpu.memory_space<vmem>>, %arg5: memref<16x8xbf16, #tpu.memory_space<vmem>>, %arg6: memref<8x16xbf16, #tpu.memory_space<vmem>>, %arg7: memref<1x16x16xi32, #tpu.memory_space<vmem>>, %arg8: memref<1x1x16xf32, #tpu.memory_space<vmem>>, %arg9: memref<1x1x16xf32, #tpu.memory_space<vmem>>, %arg10: memref<1x1x16xf32, #tpu.memory_space<vmem>>) attributes {dimension_semantics = [#tpu.dimension_semantics<parallel>, #tpu.dimension_semantics<parallel>, #tpu.dimension_semantics<arbitrary>], iteration_bounds = array<i64: 2, 1, 1>, scalar_prefetch = 0 : i64, scratch_operands = 0 : i64, tpu.core_type = #tpu.core_type<tc>, window_params = [{transform_indices = @transform_0, window_bounds = array<i64: 1, 8, 16, 16>}, {transform_indices = @transform_1, window_bounds = array<i64: 1, 8, 8, 8>}, {transform_indices = @transform_2, window_bounds = array<i64: 16, 8>}, {pipeline_mode = #tpu.pipeline_mode<synchronous>, transform_indices = @transform_3, window_bounds = array<i64: 8, 16>}, {transform_indices = @transform_4, window_bounds = array<i64: 1, 16, 16>}, {transform_indices = @transform_5, window_bounds = array<i64: 1, 1, 16>}, {transform_indices = @transform_6, window_bounds = array<i64: 1, 1, 16>}, {transform_indices = @transform_7, window_bounds = array<i64: 1, 1, 16>}]} {
    %c0 = arith.constant 0 : index
    %c0_0 = arith.constant 0 : index
    %c0_1 = arith.constant 0 : index
    %0 = vector.load %arg7[%c0, %c0_0, %c0_1] : memref<1x16x16xi32, #tpu.memory_space<vmem>>, vector<1x16x16xi32>
    %1 = vector.shape_cast %0 : vector<1x16x16xi32> to vector<16x16xi32>
    %c0_i32 = arith.constant 0 : i32
    %2 = vector.broadcast %c0_i32 : i32 to vector<16x16xi32>
    %3 = arith.cmpi ne, %1, %2 : vector<16x16xi32>
    %c0_2 = arith.constant 0 : index
    %c0_3 = arith.constant 0 : index
    %c0_4 = arith.constant 0 : index
    %c0_5 = arith.constant 0 : index
    %4 = vector.load %arg3[%c0_2, %c0_3, %c0_4, %c0_5] : memref<1x8x16x16xf32, #tpu.memory_space<vmem>>, vector<1x1x16x16xf32>
    %5 = vector.shape_cast %4 : vector<1x1x16x16xf32> to vector<16x16xf32>
    %c0_6 = arith.constant 0 : index
    %c1 = arith.constant 1 : index
    %c0_7 = arith.constant 0 : index
    %c0_8 = arith.constant 0 : index
    %6 = vector.load %arg3[%c0_6, %c1, %c0_7, %c0_8] : memref<1x8x16x16xf32, #tpu.memory_space<vmem>>, vector<1x1x16x16xf32>
    %7 = vector.shape_cast %6 : vector<1x1x16x16xf32> to vector<16x16xf32>
    %8 = arith.maximumf %5, %7 : vector<16x16xf32>
    %c0_9 = arith.constant 0 : index
    %c2 = arith.constant 2 : index
    %c0_10 = arith.constant 0 : index
    %c0_11 = arith.constant 0 : index
    %9 = vector.load %arg3[%c0_9, %c2, %c0_10, %c0_11] : memref<1x8x16x16xf32, #tpu.memory_space<vmem>>, vector<1x1x16x16xf32>
    %10 = vector.shape_cast %9 : vector<1x1x16x16xf32> to vector<16x16xf32>
    %11 = arith.maximumf %8, %10 : vector<16x16xf32>
    %c0_12 = arith.constant 0 : index
    %c3 = arith.constant 3 : index
    %c0_13 = arith.constant 0 : index
    %c0_14 = arith.constant 0 : index
    %12 = vector.load %arg3[%c0_12, %c3, %c0_13, %c0_14] : memref<1x8x16x16xf32, #tpu.memory_space<vmem>>, vector<1x1x16x16xf32>
    %13 = vector.shape_cast %12 : vector<1x1x16x16xf32> to vector<16x16xf32>
    %14 = arith.maximumf %11, %13 : vector<16x16xf32>
    %c0_15 = arith.constant 0 : index
    %c4 = arith.constant 4 : index
    %c0_16 = arith.constant 0 : index
    %c0_17 = arith.constant 0 : index
    %15 = vector.load %arg3[%c0_15, %c4, %c0_16, %c0_17] : memref<1x8x16x16xf32, #tpu.memory_space<vmem>>, vector<1x1x16x16xf32>
    %16 = vector.shape_cast %15 : vector<1x1x16x16xf32> to vector<16x16xf32>
    %17 = arith.maximumf %14, %16 : vector<16x16xf32>
    %c0_18 = arith.constant 0 : index
    %c5 = arith.constant 5 : index
    %c0_19 = arith.constant 0 : index
    %c0_20 = arith.constant 0 : index
    %18 = vector.load %arg3[%c0_18, %c5, %c0_19, %c0_20] : memref<1x8x16x16xf32, #tpu.memory_space<vmem>>, vector<1x1x16x16xf32>
    %19 = vector.shape_cast %18 : vector<1x1x16x16xf32> to vector<16x16xf32>
    %20 = arith.maximumf %17, %19 : vector<16x16xf32>
    %c0_21 = arith.constant 0 : index
    %c6 = arith.constant 6 : index
    %c0_22 = arith.constant 0 : index
    %c0_23 = arith.constant 0 : index
    %21 = vector.load %arg3[%c0_21, %c6, %c0_22, %c0_23] : memref<1x8x16x16xf32, #tpu.memory_space<vmem>>, vector<1x1x16x16xf32>
    %22 = vector.shape_cast %21 : vector<1x1x16x16xf32> to vector<16x16xf32>
    %23 = arith.maximumf %20, %22 : vector<16x16xf32>
    %c0_24 = arith.constant 0 : index
    %c7 = arith.constant 7 : index
    %c0_25 = arith.constant 0 : index
    %c0_26 = arith.constant 0 : index
    %24 = vector.load %arg3[%c0_24, %c7, %c0_25, %c0_26] : memref<1x8x16x16xf32, #tpu.memory_space<vmem>>, vector<1x1x16x16xf32>
    %25 = vector.shape_cast %24 : vector<1x1x16x16xf32> to vector<16x16xf32>
    %26 = arith.maximumf %23, %25 : vector<16x16xf32>
    %cst = arith.constant 0.000000e+00 : f32
    %27 = vector.broadcast %cst : f32 to vector<16x16xf32>
    %cst_27 = arith.constant 0.000000e+00 : f32
    %28 = vector.broadcast %cst_27 : f32 to vector<16x16xf32>
    %c0_28 = arith.constant 0 : index
    %c0_29 = arith.constant 0 : index
    %c0_30 = arith.constant 0 : index
    %c0_31 = arith.constant 0 : index
    %29 = vector.load %arg3[%c0_28, %c0_29, %c0_30, %c0_31] : memref<1x8x16x16xf32, #tpu.memory_space<vmem>>, vector<1x1x16x16xf32>
    %30 = vector.shape_cast %29 : vector<1x1x16x16xf32> to vector<16x16xf32>
    %31 = arith.subf %30, %26 : vector<16x16xf32>
    %32 = math.exp %31 : vector<16x16xf32>
    %33 = arith.addf %27, %32 : vector<16x16xf32>
    %c1_i32 = arith.constant 1 : i32
    %34 = vector.broadcast %c1_i32 : i32 to vector<16x16xi32>
    %35 = arith.andi %1, %34 : vector<16x16xi32>
    %c0_i32_32 = arith.constant 0 : i32
    %36 = vector.broadcast %c0_i32_32 : i32 to vector<16x16xi32>
    %37 = arith.cmpi ne, %35, %36 : vector<16x16xi32>
    %cst_33 = arith.constant 0.000000e+00 : f32
    %38 = vector.broadcast %cst_33 : f32 to vector<16x16xf32>
    %39 = arith.select %37, %32, %38 : vector<16x16xi1>, vector<16x16xf32>
    %40 = arith.addf %28, %39 : vector<16x16xf32>
    %c0_34 = arith.constant 0 : index
    %c1_35 = arith.constant 1 : index
    %c0_36 = arith.constant 0 : index
    %c0_37 = arith.constant 0 : index
    %41 = vector.load %arg3[%c0_34, %c1_35, %c0_36, %c0_37] : memref<1x8x16x16xf32, #tpu.memory_space<vmem>>, vector<1x1x16x16xf32>
    %42 = vector.shape_cast %41 : vector<1x1x16x16xf32> to vector<16x16xf32>
    %43 = arith.subf %42, %26 : vector<16x16xf32>
    %44 = math.exp %43 : vector<16x16xf32>
    %45 = arith.addf %33, %44 : vector<16x16xf32>
    %c2_i32 = arith.constant 2 : i32
    %46 = vector.broadcast %c2_i32 : i32 to vector<16x16xi32>
    %47 = arith.andi %1, %46 : vector<16x16xi32>
    %c0_i32_38 = arith.constant 0 : i32
    %48 = vector.broadcast %c0_i32_38 : i32 to vector<16x16xi32>
    %49 = arith.cmpi ne, %47, %48 : vector<16x16xi32>
    %cst_39 = arith.constant 0.000000e+00 : f32
    %50 = vector.broadcast %cst_39 : f32 to vector<16x16xf32>
    %51 = arith.select %49, %44, %50 : vector<16x16xi1>, vector<16x16xf32>
    %52 = arith.addf %40, %51 : vector<16x16xf32>
    %c0_40 = arith.constant 0 : index
    %c2_41 = arith.constant 2 : index
    %c0_42 = arith.constant 0 : index
    %c0_43 = arith.constant 0 : index
    %53 = vector.load %arg3[%c0_40, %c2_41, %c0_42, %c0_43] : memref<1x8x16x16xf32, #tpu.memory_space<vmem>>, vector<1x1x16x16xf32>
    %54 = vector.shape_cast %53 : vector<1x1x16x16xf32> to vector<16x16xf32>
    %55 = arith.subf %54, %26 : vector<16x16xf32>
    %56 = math.exp %55 : vector<16x16xf32>
    %57 = arith.addf %45, %56 : vector<16x16xf32>
    %c4_i32 = arith.constant 4 : i32
    %58 = vector.broadcast %c4_i32 : i32 to vector<16x16xi32>
    %59 = arith.andi %1, %58 : vector<16x16xi32>
    %c0_i32_44 = arith.constant 0 : i32
    %60 = vector.broadcast %c0_i32_44 : i32 to vector<16x16xi32>
    %61 = arith.cmpi ne, %59, %60 : vector<16x16xi32>
    %cst_45 = arith.constant 0.000000e+00 : f32
    %62 = vector.broadcast %cst_45 : f32 to vector<16x16xf32>
    %63 = arith.select %61, %56, %62 : vector<16x16xi1>, vector<16x16xf32>
    %64 = arith.addf %52, %63 : vector<16x16xf32>
    %c0_46 = arith.constant 0 : index
    %c3_47 = arith.constant 3 : index
    %c0_48 = arith.constant 0 : index
    %c0_49 = arith.constant 0 : index
    %65 = vector.load %arg3[%c0_46, %c3_47, %c0_48, %c0_49] : memref<1x8x16x16xf32, #tpu.memory_space<vmem>>, vector<1x1x16x16xf32>
    %66 = vector.shape_cast %65 : vector<1x1x16x16xf32> to vector<16x16xf32>
    %67 = arith.subf %66, %26 : vector<16x16xf32>
    %68 = math.exp %67 : vector<16x16xf32>
    %69 = arith.addf %57, %68 : vector<16x16xf32>
    %c8_i32 = arith.constant 8 : i32
    %70 = vector.broadcast %c8_i32 : i32 to vector<16x16xi32>
    %71 = arith.andi %1, %70 : vector<16x16xi32>
    %c0_i32_50 = arith.constant 0 : i32
    %72 = vector.broadcast %c0_i32_50 : i32 to vector<16x16xi32>
    %73 = arith.cmpi ne, %71, %72 : vector<16x16xi32>
    %cst_51 = arith.constant 0.000000e+00 : f32
    %74 = vector.broadcast %cst_51 : f32 to vector<16x16xf32>
    %75 = arith.select %73, %68, %74 : vector<16x16xi1>, vector<16x16xf32>
    %76 = arith.addf %64, %75 : vector<16x16xf32>
    %c0_52 = arith.constant 0 : index
    %c4_53 = arith.constant 4 : index
    %c0_54 = arith.constant 0 : index
    %c0_55 = arith.constant 0 : index
    %77 = vector.load %arg3[%c0_52, %c4_53, %c0_54, %c0_55] : memref<1x8x16x16xf32, #tpu.memory_space<vmem>>, vector<1x1x16x16xf32>
    %78 = vector.shape_cast %77 : vector<1x1x16x16xf32> to vector<16x16xf32>
    %79 = arith.subf %78, %26 : vector<16x16xf32>
    %80 = math.exp %79 : vector<16x16xf32>
    %81 = arith.addf %69, %80 : vector<16x16xf32>
    %c16_i32 = arith.constant 16 : i32
    %82 = vector.broadcast %c16_i32 : i32 to vector<16x16xi32>
    %83 = arith.andi %1, %82 : vector<16x16xi32>
    %c0_i32_56 = arith.constant 0 : i32
    %84 = vector.broadcast %c0_i32_56 : i32 to vector<16x16xi32>
    %85 = arith.cmpi ne, %83, %84 : vector<16x16xi32>
    %cst_57 = arith.constant 0.000000e+00 : f32
    %86 = vector.broadcast %cst_57 : f32 to vector<16x16xf32>
    %87 = arith.select %85, %80, %86 : vector<16x16xi1>, vector<16x16xf32>
    %88 = arith.addf %76, %87 : vector<16x16xf32>
    %c0_58 = arith.constant 0 : index
    %c5_59 = arith.constant 5 : index
    %c0_60 = arith.constant 0 : index
    %c0_61 = arith.constant 0 : index
    %89 = vector.load %arg3[%c0_58, %c5_59, %c0_60, %c0_61] : memref<1x8x16x16xf32, #tpu.memory_space<vmem>>, vector<1x1x16x16xf32>
    %90 = vector.shape_cast %89 : vector<1x1x16x16xf32> to vector<16x16xf32>
    %91 = arith.subf %90, %26 : vector<16x16xf32>
    %92 = math.exp %91 : vector<16x16xf32>
    %93 = arith.addf %81, %92 : vector<16x16xf32>
    %c32_i32 = arith.constant 32 : i32
    %94 = vector.broadcast %c32_i32 : i32 to vector<16x16xi32>
    %95 = arith.andi %1, %94 : vector<16x16xi32>
    %c0_i32_62 = arith.constant 0 : i32
    %96 = vector.broadcast %c0_i32_62 : i32 to vector<16x16xi32>
    %97 = arith.cmpi ne, %95, %96 : vector<16x16xi32>
    %cst_63 = arith.constant 0.000000e+00 : f32
    %98 = vector.broadcast %cst_63 : f32 to vector<16x16xf32>
    %99 = arith.select %97, %92, %98 : vector<16x16xi1>, vector<16x16xf32>
    %100 = arith.addf %88, %99 : vector<16x16xf32>
    %c0_64 = arith.constant 0 : index
    %c6_65 = arith.constant 6 : index
    %c0_66 = arith.constant 0 : index
    %c0_67 = arith.constant 0 : index
    %101 = vector.load %arg3[%c0_64, %c6_65, %c0_66, %c0_67] : memref<1x8x16x16xf32, #tpu.memory_space<vmem>>, vector<1x1x16x16xf32>
    %102 = vector.shape_cast %101 : vector<1x1x16x16xf32> to vector<16x16xf32>
    %103 = arith.subf %102, %26 : vector<16x16xf32>
    %104 = math.exp %103 : vector<16x16xf32>
    %105 = arith.addf %93, %104 : vector<16x16xf32>
    %c64_i32 = arith.constant 64 : i32
    %106 = vector.broadcast %c64_i32 : i32 to vector<16x16xi32>
    %107 = arith.andi %1, %106 : vector<16x16xi32>
    %c0_i32_68 = arith.constant 0 : i32
    %108 = vector.broadcast %c0_i32_68 : i32 to vector<16x16xi32>
    %109 = arith.cmpi ne, %107, %108 : vector<16x16xi32>
    %cst_69 = arith.constant 0.000000e+00 : f32
    %110 = vector.broadcast %cst_69 : f32 to vector<16x16xf32>
    %111 = arith.select %109, %104, %110 : vector<16x16xi1>, vector<16x16xf32>
    %112 = arith.addf %100, %111 : vector<16x16xf32>
    %c0_70 = arith.constant 0 : index
    %c7_71 = arith.constant 7 : index
    %c0_72 = arith.constant 0 : index
    %c0_73 = arith.constant 0 : index
    %113 = vector.load %arg3[%c0_70, %c7_71, %c0_72, %c0_73] : memref<1x8x16x16xf32, #tpu.memory_space<vmem>>, vector<1x1x16x16xf32>
    %114 = vector.shape_cast %113 : vector<1x1x16x16xf32> to vector<16x16xf32>
    %115 = arith.subf %114, %26 : vector<16x16xf32>
    %116 = math.exp %115 : vector<16x16xf32>
    %117 = arith.addf %105, %116 : vector<16x16xf32>
    %c128_i32 = arith.constant 128 : i32
    %118 = vector.broadcast %c128_i32 : i32 to vector<16x16xi32>
    %119 = arith.andi %1, %118 : vector<16x16xi32>
    %c0_i32_74 = arith.constant 0 : i32
    %120 = vector.broadcast %c0_i32_74 : i32 to vector<16x16xi32>
    %121 = arith.cmpi ne, %119, %120 : vector<16x16xi32>
    %cst_75 = arith.constant 0.000000e+00 : f32
    %122 = vector.broadcast %cst_75 : f32 to vector<16x16xf32>
    %123 = arith.select %121, %116, %122 : vector<16x16xi1>, vector<16x16xf32>
    %124 = arith.addf %112, %123 : vector<16x16xf32>
    %125 = math.log %117 : vector<16x16xf32>
    %cst_76 = arith.constant 1.000000e-30 : f32
    %126 = vector.broadcast %cst_76 : f32 to vector<16x16xf32>
    %127 = arith.maximumf %124, %126 : vector<16x16xf32>
    %128 = math.log %127 : vector<16x16xf32>
    %129 = arith.subf %125, %128 : vector<16x16xf32>
    %cst_77 = arith.constant 0.000000e+00 : f32
    %130 = vector.broadcast %cst_77 : f32 to vector<16x16xf32>
    %131 = arith.select %3, %129, %130 : vector<16x16xi1>, vector<16x16xf32>
    %c0_78 = arith.constant 0 : index
    %c0_79 = arith.constant 0 : index
    %132 = vector.load %arg5[%c0_78, %c0_79] : memref<16x8xbf16, #tpu.memory_space<vmem>>, vector<16x8xbf16>
    %c0_80 = arith.constant 0 : index
    %c0_81 = arith.constant 0 : index
    %133 = vector.load %arg6[%c0_80, %c0_81] : memref<8x16xbf16, #tpu.memory_space<vmem>>, vector<8x16xbf16>
    %c0_82 = arith.constant 0 : index
    %c0_83 = arith.constant 0 : index
    %c0_84 = arith.constant 0 : index
    %c0_85 = arith.constant 0 : index
    %134 = vector.load %arg4[%c0_82, %c0_83, %c0_84, %c0_85] : memref<1x8x8x8xf32, #tpu.memory_space<vmem>>, vector<1x1x8x8xf32>
    %135 = vector.shape_cast %134 : vector<1x1x8x8xf32> to vector<8x8xf32>
    %136 = arith.truncf %135 : vector<8x8xf32> to vector<8x8xbf16>
    %cst_86 = arith.constant dense<0.000000e+00> : vector<16x8xf32>
    %137 = tpu.matmul %132, %136, %cst_86 {dimension_numbers = #tpu.dot_dimension_numbers<[1], [0], [0], [1], [0, 0, 1, 1], [], []>} : vector<16x8xbf16>, vector<8x8xbf16>, vector<16x8xf32> -> vector<16x8xf32>
    %138 = arith.truncf %137 : vector<16x8xf32> to vector<16x8xbf16>
    %cst_87 = arith.constant dense<0.000000e+00> : vector<16x16xf32>
    %139 = tpu.matmul %138, %133, %cst_87 {dimension_numbers = #tpu.dot_dimension_numbers<[1], [0], [0], [1], [0, 0, 1, 1], [], []>} : vector<16x8xbf16>, vector<8x16xbf16>, vector<16x16xf32> -> vector<16x16xf32>
    %cst_88 = arith.constant 1.000000e+00 : f32
    %140 = vector.broadcast %cst_88 : f32 to vector<16x16xf32>
    %c1_i32_89 = arith.constant 1 : i32
    %141 = vector.broadcast %c1_i32_89 : i32 to vector<16x16xi32>
    %142 = arith.andi %1, %141 : vector<16x16xi32>
    %c0_i32_90 = arith.constant 0 : i32
    %143 = vector.broadcast %c0_i32_90 : i32 to vector<16x16xi32>
    %144 = arith.cmpi ne, %142, %143 : vector<16x16xi32>
    %cst_91 = arith.constant 0.000000e+00 : f32
    %145 = vector.broadcast %cst_91 : f32 to vector<16x16xf32>
    %146 = arith.select %144, %140, %145 : vector<16x16xi1>, vector<16x16xf32>
    %c0_92 = arith.constant 0 : index
    %c1_93 = arith.constant 1 : index
    %c0_94 = arith.constant 0 : index
    %c0_95 = arith.constant 0 : index
    %147 = vector.load %arg4[%c0_92, %c1_93, %c0_94, %c0_95] : memref<1x8x8x8xf32, #tpu.memory_space<vmem>>, vector<1x1x8x8xf32>
    %148 = vector.shape_cast %147 : vector<1x1x8x8xf32> to vector<8x8xf32>
    %149 = arith.truncf %148 : vector<8x8xf32> to vector<8x8xbf16>
    %cst_96 = arith.constant dense<0.000000e+00> : vector<16x8xf32>
    %150 = tpu.matmul %132, %149, %cst_96 {dimension_numbers = #tpu.dot_dimension_numbers<[1], [0], [0], [1], [0, 0, 1, 1], [], []>} : vector<16x8xbf16>, vector<8x8xbf16>, vector<16x8xf32> -> vector<16x8xf32>
    %151 = arith.truncf %150 : vector<16x8xf32> to vector<16x8xbf16>
    %cst_97 = arith.constant dense<0.000000e+00> : vector<16x16xf32>
    %152 = tpu.matmul %151, %133, %cst_97 {dimension_numbers = #tpu.dot_dimension_numbers<[1], [0], [0], [1], [0, 0, 1, 1], [], []>} : vector<16x8xbf16>, vector<8x16xbf16>, vector<16x16xf32> -> vector<16x16xf32>
    %153 = arith.maximumf %139, %152 : vector<16x16xf32>
    %154 = arith.subf %139, %153 : vector<16x16xf32>
    %155 = math.exp %154 : vector<16x16xf32>
    %156 = arith.subf %152, %153 : vector<16x16xf32>
    %157 = math.exp %156 : vector<16x16xf32>
    %158 = arith.mulf %140, %155 : vector<16x16xf32>
    %159 = arith.addf %158, %157 : vector<16x16xf32>
    %160 = arith.mulf %146, %155 : vector<16x16xf32>
    %c2_i32_98 = arith.constant 2 : i32
    %161 = vector.broadcast %c2_i32_98 : i32 to vector<16x16xi32>
    %162 = arith.andi %1, %161 : vector<16x16xi32>
    %c0_i32_99 = arith.constant 0 : i32
    %163 = vector.broadcast %c0_i32_99 : i32 to vector<16x16xi32>
    %164 = arith.cmpi ne, %162, %163 : vector<16x16xi32>
    %cst_100 = arith.constant 0.000000e+00 : f32
    %165 = vector.broadcast %cst_100 : f32 to vector<16x16xf32>
    %166 = arith.select %164, %157, %165 : vector<16x16xi1>, vector<16x16xf32>
    %167 = arith.addf %160, %166 : vector<16x16xf32>
    %c0_101 = arith.constant 0 : index
    %c2_102 = arith.constant 2 : index
    %c0_103 = arith.constant 0 : index
    %c0_104 = arith.constant 0 : index
    %168 = vector.load %arg4[%c0_101, %c2_102, %c0_103, %c0_104] : memref<1x8x8x8xf32, #tpu.memory_space<vmem>>, vector<1x1x8x8xf32>
    %169 = vector.shape_cast %168 : vector<1x1x8x8xf32> to vector<8x8xf32>
    %170 = arith.truncf %169 : vector<8x8xf32> to vector<8x8xbf16>
    %cst_105 = arith.constant dense<0.000000e+00> : vector<16x8xf32>
    %171 = tpu.matmul %132, %170, %cst_105 {dimension_numbers = #tpu.dot_dimension_numbers<[1], [0], [0], [1], [0, 0, 1, 1], [], []>} : vector<16x8xbf16>, vector<8x8xbf16>, vector<16x8xf32> -> vector<16x8xf32>
    %172 = arith.truncf %171 : vector<16x8xf32> to vector<16x8xbf16>
    %cst_106 = arith.constant dense<0.000000e+00> : vector<16x16xf32>
    %173 = tpu.matmul %172, %133, %cst_106 {dimension_numbers = #tpu.dot_dimension_numbers<[1], [0], [0], [1], [0, 0, 1, 1], [], []>} : vector<16x8xbf16>, vector<8x16xbf16>, vector<16x16xf32> -> vector<16x16xf32>
    %174 = arith.maximumf %153, %173 : vector<16x16xf32>
    %175 = arith.subf %153, %174 : vector<16x16xf32>
    %176 = math.exp %175 : vector<16x16xf32>
    %177 = arith.subf %173, %174 : vector<16x16xf32>
    %178 = math.exp %177 : vector<16x16xf32>
    %179 = arith.mulf %159, %176 : vector<16x16xf32>
    %180 = arith.addf %179, %178 : vector<16x16xf32>
    %181 = arith.mulf %167, %176 : vector<16x16xf32>
    %c4_i32_107 = arith.constant 4 : i32
    %182 = vector.broadcast %c4_i32_107 : i32 to vector<16x16xi32>
    %183 = arith.andi %1, %182 : vector<16x16xi32>
    %c0_i32_108 = arith.constant 0 : i32
    %184 = vector.broadcast %c0_i32_108 : i32 to vector<16x16xi32>
    %185 = arith.cmpi ne, %183, %184 : vector<16x16xi32>
    %cst_109 = arith.constant 0.000000e+00 : f32
    %186 = vector.broadcast %cst_109 : f32 to vector<16x16xf32>
    %187 = arith.select %185, %178, %186 : vector<16x16xi1>, vector<16x16xf32>
    %188 = arith.addf %181, %187 : vector<16x16xf32>
    %c0_110 = arith.constant 0 : index
    %c3_111 = arith.constant 3 : index
    %c0_112 = arith.constant 0 : index
    %c0_113 = arith.constant 0 : index
    %189 = vector.load %arg4[%c0_110, %c3_111, %c0_112, %c0_113] : memref<1x8x8x8xf32, #tpu.memory_space<vmem>>, vector<1x1x8x8xf32>
    %190 = vector.shape_cast %189 : vector<1x1x8x8xf32> to vector<8x8xf32>
    %191 = arith.truncf %190 : vector<8x8xf32> to vector<8x8xbf16>
    %cst_114 = arith.constant dense<0.000000e+00> : vector<16x8xf32>
    %192 = tpu.matmul %132, %191, %cst_114 {dimension_numbers = #tpu.dot_dimension_numbers<[1], [0], [0], [1], [0, 0, 1, 1], [], []>} : vector<16x8xbf16>, vector<8x8xbf16>, vector<16x8xf32> -> vector<16x8xf32>
    %193 = arith.truncf %192 : vector<16x8xf32> to vector<16x8xbf16>
    %cst_115 = arith.constant dense<0.000000e+00> : vector<16x16xf32>
    %194 = tpu.matmul %193, %133, %cst_115 {dimension_numbers = #tpu.dot_dimension_numbers<[1], [0], [0], [1], [0, 0, 1, 1], [], []>} : vector<16x8xbf16>, vector<8x16xbf16>, vector<16x16xf32> -> vector<16x16xf32>
    %195 = arith.maximumf %174, %194 : vector<16x16xf32>
    %196 = arith.subf %174, %195 : vector<16x16xf32>
    %197 = math.exp %196 : vector<16x16xf32>
    %198 = arith.subf %194, %195 : vector<16x16xf32>
    %199 = math.exp %198 : vector<16x16xf32>
    %200 = arith.mulf %180, %197 : vector<16x16xf32>
    %201 = arith.addf %200, %199 : vector<16x16xf32>
    %202 = arith.mulf %188, %197 : vector<16x16xf32>
    %c8_i32_116 = arith.constant 8 : i32
    %203 = vector.broadcast %c8_i32_116 : i32 to vector<16x16xi32>
    %204 = arith.andi %1, %203 : vector<16x16xi32>
    %c0_i32_117 = arith.constant 0 : i32
    %205 = vector.broadcast %c0_i32_117 : i32 to vector<16x16xi32>
    %206 = arith.cmpi ne, %204, %205 : vector<16x16xi32>
    %cst_118 = arith.constant 0.000000e+00 : f32
    %207 = vector.broadcast %cst_118 : f32 to vector<16x16xf32>
    %208 = arith.select %206, %199, %207 : vector<16x16xi1>, vector<16x16xf32>
    %209 = arith.addf %202, %208 : vector<16x16xf32>
    %c0_119 = arith.constant 0 : index
    %c4_120 = arith.constant 4 : index
    %c0_121 = arith.constant 0 : index
    %c0_122 = arith.constant 0 : index
    %210 = vector.load %arg4[%c0_119, %c4_120, %c0_121, %c0_122] : memref<1x8x8x8xf32, #tpu.memory_space<vmem>>, vector<1x1x8x8xf32>
    %211 = vector.shape_cast %210 : vector<1x1x8x8xf32> to vector<8x8xf32>
    %212 = arith.truncf %211 : vector<8x8xf32> to vector<8x8xbf16>
    %cst_123 = arith.constant dense<0.000000e+00> : vector<16x8xf32>
    %213 = tpu.matmul %132, %212, %cst_123 {dimension_numbers = #tpu.dot_dimension_numbers<[1], [0], [0], [1], [0, 0, 1, 1], [], []>} : vector<16x8xbf16>, vector<8x8xbf16>, vector<16x8xf32> -> vector<16x8xf32>
    %214 = arith.truncf %213 : vector<16x8xf32> to vector<16x8xbf16>
    %cst_124 = arith.constant dense<0.000000e+00> : vector<16x16xf32>
    %215 = tpu.matmul %214, %133, %cst_124 {dimension_numbers = #tpu.dot_dimension_numbers<[1], [0], [0], [1], [0, 0, 1, 1], [], []>} : vector<16x8xbf16>, vector<8x16xbf16>, vector<16x16xf32> -> vector<16x16xf32>
    %216 = arith.maximumf %195, %215 : vector<16x16xf32>
    %217 = arith.subf %195, %216 : vector<16x16xf32>
    %218 = math.exp %217 : vector<16x16xf32>
    %219 = arith.subf %215, %216 : vector<16x16xf32>
    %220 = math.exp %219 : vector<16x16xf32>
    %221 = arith.mulf %201, %218 : vector<16x16xf32>
    %222 = arith.addf %221, %220 : vector<16x16xf32>
    %223 = arith.mulf %209, %218 : vector<16x16xf32>
    %c16_i32_125 = arith.constant 16 : i32
    %224 = vector.broadcast %c16_i32_125 : i32 to vector<16x16xi32>
    %225 = arith.andi %1, %224 : vector<16x16xi32>
    %c0_i32_126 = arith.constant 0 : i32
    %226 = vector.broadcast %c0_i32_126 : i32 to vector<16x16xi32>
    %227 = arith.cmpi ne, %225, %226 : vector<16x16xi32>
    %cst_127 = arith.constant 0.000000e+00 : f32
    %228 = vector.broadcast %cst_127 : f32 to vector<16x16xf32>
    %229 = arith.select %227, %220, %228 : vector<16x16xi1>, vector<16x16xf32>
    %230 = arith.addf %223, %229 : vector<16x16xf32>
    %c0_128 = arith.constant 0 : index
    %c5_129 = arith.constant 5 : index
    %c0_130 = arith.constant 0 : index
    %c0_131 = arith.constant 0 : index
    %231 = vector.load %arg4[%c0_128, %c5_129, %c0_130, %c0_131] : memref<1x8x8x8xf32, #tpu.memory_space<vmem>>, vector<1x1x8x8xf32>
    %232 = vector.shape_cast %231 : vector<1x1x8x8xf32> to vector<8x8xf32>
    %233 = arith.truncf %232 : vector<8x8xf32> to vector<8x8xbf16>
    %cst_132 = arith.constant dense<0.000000e+00> : vector<16x8xf32>
    %234 = tpu.matmul %132, %233, %cst_132 {dimension_numbers = #tpu.dot_dimension_numbers<[1], [0], [0], [1], [0, 0, 1, 1], [], []>} : vector<16x8xbf16>, vector<8x8xbf16>, vector<16x8xf32> -> vector<16x8xf32>
    %235 = arith.truncf %234 : vector<16x8xf32> to vector<16x8xbf16>
    %cst_133 = arith.constant dense<0.000000e+00> : vector<16x16xf32>
    %236 = tpu.matmul %235, %133, %cst_133 {dimension_numbers = #tpu.dot_dimension_numbers<[1], [0], [0], [1], [0, 0, 1, 1], [], []>} : vector<16x8xbf16>, vector<8x16xbf16>, vector<16x16xf32> -> vector<16x16xf32>
    %237 = arith.maximumf %216, %236 : vector<16x16xf32>
    %238 = arith.subf %216, %237 : vector<16x16xf32>
    %239 = math.exp %238 : vector<16x16xf32>
    %240 = arith.subf %236, %237 : vector<16x16xf32>
    %241 = math.exp %240 : vector<16x16xf32>
    %242 = arith.mulf %222, %239 : vector<16x16xf32>
    %243 = arith.addf %242, %241 : vector<16x16xf32>
    %244 = arith.mulf %230, %239 : vector<16x16xf32>
    %c32_i32_134 = arith.constant 32 : i32
    %245 = vector.broadcast %c32_i32_134 : i32 to vector<16x16xi32>
    %246 = arith.andi %1, %245 : vector<16x16xi32>
    %c0_i32_135 = arith.constant 0 : i32
    %247 = vector.broadcast %c0_i32_135 : i32 to vector<16x16xi32>
    %248 = arith.cmpi ne, %246, %247 : vector<16x16xi32>
    %cst_136 = arith.constant 0.000000e+00 : f32
    %249 = vector.broadcast %cst_136 : f32 to vector<16x16xf32>
    %250 = arith.select %248, %241, %249 : vector<16x16xi1>, vector<16x16xf32>
    %251 = arith.addf %244, %250 : vector<16x16xf32>
    %c0_137 = arith.constant 0 : index
    %c6_138 = arith.constant 6 : index
    %c0_139 = arith.constant 0 : index
    %c0_140 = arith.constant 0 : index
    %252 = vector.load %arg4[%c0_137, %c6_138, %c0_139, %c0_140] : memref<1x8x8x8xf32, #tpu.memory_space<vmem>>, vector<1x1x8x8xf32>
    %253 = vector.shape_cast %252 : vector<1x1x8x8xf32> to vector<8x8xf32>
    %254 = arith.truncf %253 : vector<8x8xf32> to vector<8x8xbf16>
    %cst_141 = arith.constant dense<0.000000e+00> : vector<16x8xf32>
    %255 = tpu.matmul %132, %254, %cst_141 {dimension_numbers = #tpu.dot_dimension_numbers<[1], [0], [0], [1], [0, 0, 1, 1], [], []>} : vector<16x8xbf16>, vector<8x8xbf16>, vector<16x8xf32> -> vector<16x8xf32>
    %256 = arith.truncf %255 : vector<16x8xf32> to vector<16x8xbf16>
    %cst_142 = arith.constant dense<0.000000e+00> : vector<16x16xf32>
    %257 = tpu.matmul %256, %133, %cst_142 {dimension_numbers = #tpu.dot_dimension_numbers<[1], [0], [0], [1], [0, 0, 1, 1], [], []>} : vector<16x8xbf16>, vector<8x16xbf16>, vector<16x16xf32> -> vector<16x16xf32>
    %258 = arith.maximumf %237, %257 : vector<16x16xf32>
    %259 = arith.subf %237, %258 : vector<16x16xf32>
    %260 = math.exp %259 : vector<16x16xf32>
    %261 = arith.subf %257, %258 : vector<16x16xf32>
    %262 = math.exp %261 : vector<16x16xf32>
    %263 = arith.mulf %243, %260 : vector<16x16xf32>
    %264 = arith.addf %263, %262 : vector<16x16xf32>
    %265 = arith.mulf %251, %260 : vector<16x16xf32>
    %c64_i32_143 = arith.constant 64 : i32
    %266 = vector.broadcast %c64_i32_143 : i32 to vector<16x16xi32>
    %267 = arith.andi %1, %266 : vector<16x16xi32>
    %c0_i32_144 = arith.constant 0 : i32
    %268 = vector.broadcast %c0_i32_144 : i32 to vector<16x16xi32>
    %269 = arith.cmpi ne, %267, %268 : vector<16x16xi32>
    %cst_145 = arith.constant 0.000000e+00 : f32
    %270 = vector.broadcast %cst_145 : f32 to vector<16x16xf32>
    %271 = arith.select %269, %262, %270 : vector<16x16xi1>, vector<16x16xf32>
    %272 = arith.addf %265, %271 : vector<16x16xf32>
    %c0_146 = arith.constant 0 : index
    %c7_147 = arith.constant 7 : index
    %c0_148 = arith.constant 0 : index
    %c0_149 = arith.constant 0 : index
    %273 = vector.load %arg4[%c0_146, %c7_147, %c0_148, %c0_149] : memref<1x8x8x8xf32, #tpu.memory_space<vmem>>, vector<1x1x8x8xf32>
    %274 = vector.shape_cast %273 : vector<1x1x8x8xf32> to vector<8x8xf32>
    %275 = arith.truncf %274 : vector<8x8xf32> to vector<8x8xbf16>
    %cst_150 = arith.constant dense<0.000000e+00> : vector<16x8xf32>
    %276 = tpu.matmul %132, %275, %cst_150 {dimension_numbers = #tpu.dot_dimension_numbers<[1], [0], [0], [1], [0, 0, 1, 1], [], []>} : vector<16x8xbf16>, vector<8x8xbf16>, vector<16x8xf32> -> vector<16x8xf32>
    %277 = arith.truncf %276 : vector<16x8xf32> to vector<16x8xbf16>
    %cst_151 = arith.constant dense<0.000000e+00> : vector<16x16xf32>
    %278 = tpu.matmul %277, %133, %cst_151 {dimension_numbers = #tpu.dot_dimension_numbers<[1], [0], [0], [1], [0, 0, 1, 1], [], []>} : vector<16x8xbf16>, vector<8x16xbf16>, vector<16x16xf32> -> vector<16x16xf32>
    %279 = arith.maximumf %258, %278 : vector<16x16xf32>
    %280 = arith.subf %258, %279 : vector<16x16xf32>
    %281 = math.exp %280 : vector<16x16xf32>
    %282 = arith.subf %278, %279 : vector<16x16xf32>
    %283 = math.exp %282 : vector<16x16xf32>
    %284 = arith.mulf %264, %281 : vector<16x16xf32>
    %285 = arith.addf %284, %283 : vector<16x16xf32>
    %286 = arith.mulf %272, %281 : vector<16x16xf32>
    %c128_i32_152 = arith.constant 128 : i32
    %287 = vector.broadcast %c128_i32_152 : i32 to vector<16x16xi32>
    %288 = arith.andi %1, %287 : vector<16x16xi32>
    %c0_i32_153 = arith.constant 0 : i32
    %289 = vector.broadcast %c0_i32_153 : i32 to vector<16x16xi32>
    %290 = arith.cmpi ne, %288, %289 : vector<16x16xi32>
    %cst_154 = arith.constant 0.000000e+00 : f32
    %291 = vector.broadcast %cst_154 : f32 to vector<16x16xf32>
    %292 = arith.select %290, %283, %291 : vector<16x16xi1>, vector<16x16xf32>
    %293 = arith.addf %286, %292 : vector<16x16xf32>
    %294 = math.log %285 : vector<16x16xf32>
    %cst_155 = arith.constant 1.000000e-30 : f32
    %295 = vector.broadcast %cst_155 : f32 to vector<16x16xf32>
    %296 = arith.maximumf %293, %295 : vector<16x16xf32>
    %297 = math.log %296 : vector<16x16xf32>
    %298 = arith.subf %294, %297 : vector<16x16xf32>
    %cst_156 = arith.constant 0.000000e+00 : f32
    %299 = vector.broadcast %cst_156 : f32 to vector<16x16xf32>
    %300 = arith.select %3, %298, %299 : vector<16x16xi1>, vector<16x16xf32>
    %c0_i32_157 = arith.constant 0 : i32
    %301 = arith.cmpi eq, %arg2, %c0_i32_157 : i32
    %302 = arith.extui %301 : i1 to i32
    %c0_i32_158 = arith.constant 0 : i32
    %303 = arith.cmpi ne, %302, %c0_i32_158 : i32
    scf.if %303 {
      %cst_180 = arith.constant 0.000000e+00 : f32
      %330 = vector.broadcast %cst_180 : f32 to vector<1x1x16xf32>
      %c0_181 = arith.constant 0 : index
      %c0_182 = arith.constant 0 : index
      %c0_183 = arith.constant 0 : index
      %331 = vector.load %arg8[%c0_181, %c0_182, %c0_183] : memref<1x1x16xf32, #tpu.memory_space<vmem>>, vector<1x1x16xf32>
      tpu.vector_store %arg8[%c0_181, %c0_182, %c0_183], %330 {strides = array<i32>} : memref<1x1x16xf32, #tpu.memory_space<vmem>>, vector<1x1x16xf32>,
      %cst_184 = arith.constant 0.000000e+00 : f32
      %332 = vector.broadcast %cst_184 : f32 to vector<1x1x16xf32>
      %c0_185 = arith.constant 0 : index
      %c0_186 = arith.constant 0 : index
      %c0_187 = arith.constant 0 : index
      %333 = vector.load %arg10[%c0_185, %c0_186, %c0_187] : memref<1x1x16xf32, #tpu.memory_space<vmem>>, vector<1x1x16xf32>
      tpu.vector_store %arg10[%c0_185, %c0_186, %c0_187], %332 {strides = array<i32>} : memref<1x1x16xf32, #tpu.memory_space<vmem>>, vector<1x1x16xf32>,
      %cst_188 = arith.constant 0.000000e+00 : f32
      %334 = vector.broadcast %cst_188 : f32 to vector<1x1x16xf32>
      %c0_189 = arith.constant 0 : index
      %c0_190 = arith.constant 0 : index
      %c0_191 = arith.constant 0 : index
      %335 = vector.load %arg9[%c0_189, %c0_190, %c0_191] : memref<1x1x16xf32, #tpu.memory_space<vmem>>, vector<1x1x16xf32>
      tpu.vector_store %arg9[%c0_189, %c0_190, %c0_191], %334 {strides = array<i32>} : memref<1x1x16xf32, #tpu.memory_space<vmem>>, vector<1x1x16xf32>,
    } else {
    }
    %c0_159 = arith.constant 0 : index
    %c0_160 = arith.constant 0 : index
    %c0_161 = arith.constant 0 : index
    %304 = vector.load %arg8[%c0_159, %c0_160, %c0_161] : memref<1x1x16xf32, #tpu.memory_space<vmem>>, vector<1x1x16xf32>
    %305 = vector.shape_cast %304 : vector<1x1x16xf32> to vector<1x16xf32>
    %cst_162 = arith.constant dense<0.000000e+00> : vector<16xf32>
    %306 = vector.multi_reduction <add>, %131, %cst_162 [0] : vector<16x16xf32> to vector<16xf32>
    %307 = vector.shape_cast %306 : vector<16xf32> to vector<1x16xf32>
    %308 = arith.addf %305, %307 : vector<1x16xf32>
    %c0_163 = arith.constant 0 : index
    %c0_164 = arith.constant 0 : index
    %c0_165 = arith.constant 0 : index
    %309 = vector.load %arg8[%c0_163, %c0_164, %c0_165] : memref<1x1x16xf32, #tpu.memory_space<vmem>>, vector<1x1x16xf32>
    %310 = vector.shape_cast %309 : vector<1x1x16xf32> to vector<1x16xf32>
    %311 = vector.shape_cast %308 : vector<1x16xf32> to vector<1x1x16xf32>
    tpu.vector_store %arg8[%c0_163, %c0_164, %c0_165], %311 {strides = array<i32>} : memref<1x1x16xf32, #tpu.memory_space<vmem>>, vector<1x1x16xf32>,
    %c0_166 = arith.constant 0 : index
    %c0_167 = arith.constant 0 : index
    %c0_168 = arith.constant 0 : index
    %312 = vector.load %arg10[%c0_166, %c0_167, %c0_168] : memref<1x1x16xf32, #tpu.memory_space<vmem>>, vector<1x1x16xf32>
    %313 = vector.shape_cast %312 : vector<1x1x16xf32> to vector<1x16xf32>
    %314 = arith.extui %3 : vector<16x16xi1> to vector<16x16xi32>
    %315 = arith.sitofp %314 : vector<16x16xi32> to vector<16x16xf32>
    %cst_169 = arith.constant dense<0.000000e+00> : vector<16xf32>
    %316 = vector.multi_reduction <add>, %315, %cst_169 [0] : vector<16x16xf32> to vector<16xf32>
    %317 = vector.shape_cast %316 : vector<16xf32> to vector<1x16xf32>
    %318 = arith.addf %313, %317 : vector<1x16xf32>
    %c0_170 = arith.constant 0 : index
    %c0_171 = arith.constant 0 : index
    %c0_172 = arith.constant 0 : index
    %319 = vector.load %arg10[%c0_170, %c0_171, %c0_172] : memref<1x1x16xf32, #tpu.memory_space<vmem>>, vector<1x1x16xf32>
    %320 = vector.shape_cast %319 : vector<1x1x16xf32> to vector<1x16xf32>
    %321 = vector.shape_cast %318 : vector<1x16xf32> to vector<1x1x16xf32>
    tpu.vector_store %arg10[%c0_170, %c0_171, %c0_172], %321 {strides = array<i32>} : memref<1x1x16xf32, #tpu.memory_space<vmem>>, vector<1x1x16xf32>,
    %c0_173 = arith.constant 0 : index
    %c0_174 = arith.constant 0 : index
    %c0_175 = arith.constant 0 : index
    %322 = vector.load %arg9[%c0_173, %c0_174, %c0_175] : memref<1x1x16xf32, #tpu.memory_space<vmem>>, vector<1x1x16xf32>
    %323 = vector.shape_cast %322 : vector<1x1x16xf32> to vector<1x16xf32>
    %cst_176 = arith.constant dense<0.000000e+00> : vector<16xf32>
    %324 = vector.multi_reduction <add>, %300, %cst_176 [0] : vector<16x16xf32> to vector<16xf32>
    %325 = vector.shape_cast %324 : vector<16xf32> to vector<1x16xf32>
    %326 = arith.addf %323, %325 : vector<1x16xf32>
    %c0_177 = arith.constant 0 : index
    %c0_178 = arith.constant 0 : index
    %c0_179 = arith.constant 0 : index
    %327 = vector.load %arg9[%c0_177, %c0_178, %c0_179] : memref<1x1x16xf32, #tpu.memory_space<vmem>>, vector<1x1x16xf32>
    %328 = vector.shape_cast %327 : vector<1x1x16xf32> to vector<1x16xf32>
    %329 = vector.shape_cast %326 : vector<1x16xf32> to vector<1x1x16xf32>
    tpu.vector_store %arg9[%c0_177, %c0_178, %c0_179], %329 {strides = array<i32>} : memref<1x1x16xf32, #tpu.memory_space<vmem>>, vector<1x1x16xf32>,
    return
  }
  func.func @transform_0(%arg0: i32, %arg1: i32, %arg2: i32) -> (i32, i32, i32, i32) {
    %c1_i32 = arith.constant 1 : i32
    %0 = arith.muli %arg1, %c1_i32 : i32
    %1 = arith.addi %0, %arg2 : i32
    %c0_i32 = arith.constant 0 : i32
    %c0_i32_0 = arith.constant 0 : i32
    %c0_i32_1 = arith.constant 0 : i32
    return %arg0, %c0_i32, %1, %c0_i32_0 : i32, i32, i32, i32
  }
  func.func @transform_1(%arg0: i32, %arg1: i32, %arg2: i32) -> (i32, i32, i32, i32) {
    %c0_i32 = arith.constant 0 : i32
    %c0_i32_0 = arith.constant 0 : i32
    %c0_i32_1 = arith.constant 0 : i32
    %c0_i32_2 = arith.constant 0 : i32
    return %arg0, %c0_i32, %c0_i32_0, %c0_i32_1 : i32, i32, i32, i32
  }
  func.func @transform_2(%arg0: i32, %arg1: i32, %arg2: i32) -> (i32, i32) {
    %c1_i32 = arith.constant 1 : i32
    %0 = arith.muli %arg1, %c1_i32 : i32
    %1 = arith.addi %0, %arg2 : i32
    %c0_i32 = arith.constant 0 : i32
    %c0_i32_0 = arith.constant 0 : i32
    return %1, %c0_i32 : i32, i32
  }
  func.func @transform_3(%arg0: i32, %arg1: i32, %arg2: i32) -> (i32, i32) {
    %c0_i32 = arith.constant 0 : i32
    %c0_i32_0 = arith.constant 0 : i32
    %c0_i32_1 = arith.constant 0 : i32
    return %c0_i32, %c0_i32_0 : i32, i32
  }
  func.func @transform_4(%arg0: i32, %arg1: i32, %arg2: i32) -> (i32, i32, i32) {
    %c1_i32 = arith.constant 1 : i32
    %0 = arith.muli %arg1, %c1_i32 : i32
    %1 = arith.addi %0, %arg2 : i32
    %c0_i32 = arith.constant 0 : i32
    %c0_i32_0 = arith.constant 0 : i32
    return %arg0, %1, %c0_i32 : i32, i32, i32
  }
  func.func @transform_5(%arg0: i32, %arg1: i32, %arg2: i32) -> (i32, i32, i32) {
    %c0_i32 = arith.constant 0 : i32
    %c0_i32_0 = arith.constant 0 : i32
    return %arg0, %arg1, %c0_i32 : i32, i32, i32
  }
  func.func @transform_6(%arg0: i32, %arg1: i32, %arg2: i32) -> (i32, i32, i32) {
    %c0_i32 = arith.constant 0 : i32
    %c0_i32_0 = arith.constant 0 : i32
    return %arg0, %arg1, %c0_i32 : i32, i32, i32
  }
  func.func @transform_7(%arg0: i32, %arg1: i32, %arg2: i32) -> (i32, i32, i32) {
    %c0_i32 = arith.constant 0 : i32
    %c0_i32_0 = arith.constant 0 : i32
    return %arg0, %arg1, %c0_i32 : i32, i32, i32
  }
}

</mosaic_0001>

<bundles_post_ra>
// kernel: tpu_custom_call.1
= control target key start
LH: loop header
LB: loop body
LE: loop exit
PB: predicated region body
PF: predicated region fallthrough
CT: control target
= control target key end

     0   :  { %s3249_s0 = inlined_call_operand.hbm [shape: f32[2,8,16,16], index: 0, kind: input, shape index: {}]   ;;  %s3250_s1 = inlined_call_operand.hbm [shape: f32[2,8,8,8], index: 1, kind: input, shape index: {}]   ;;  %s3251_s2 = inlined_call_operand.vmem [shape: bf16[16,8], index: 2, kind: input, shape index: {}]   ;;  %s3252_s3 = inlined_call_operand.vmem [shape: bf16[8,16], index: 3, kind: input, shape index: {}]   ;;  %s3253_s4 = inlined_call_operand.hbm [shape: s32[2,16,16], index: 4, kind: input, shape index: {}]   ;;  %s3254_s5 = inlined_call_operand.hbm [shape: f32[2,1,16], index: 5, kind: output, shape index: {0}]   ;;  %s3255_s6 = inlined_call_operand.hbm [shape: f32[2,1,16], index: 6, kind: output, shape index: {1}]   ;;  %s3256_s7 = inlined_call_operand.hbm [shape: f32[2,1,16], index: 7, kind: output, shape index: {2}]  }
   0x1   :  { %3273 = sst [smem:[#allocation21_spill]] %s3249_s0 }
   0x2   :  { %3274 = sst [smem:[#allocation22_spill]] %s3250_s1 }
   0x3   :  { %13 = vsyncpa [#allocation3], 0 }
   0x4   :  { %15 = vsyncpa [#allocation3 + $0x1], 0 }
   0x5   :  { %16 = vsyncpa [#allocation6], 0 }
   0x6   :  { %18 = vsyncpa [#allocation6 + $0x1], 0 }
   0x7   :  { %19 = vsyncpa [#allocation4], 0 }
   0x8   :  { %21 = vsyncpa [#allocation4 + $0x1], 0 }
   0x9   :  { %22 = vsyncpa [#allocation10], 0 }
   0xa   :  { %24 = vsyncpa [#allocation10 + $0x1], 0  ;;  %s2550_s24 = smov 0   ;;  %s2552_s25 = smov 0  }
   0xb   :  { %s2554_s26 = smov 0   ;;  %s2556_s27 = smov 0  }
   0xc   :  { %s2558_s28 = smov 0   ;;  %s2560_s29 = smov 0  }
   0xd LB: > { %3275 = sst [smem:[#allocation16_spill]] %s2486_s26  ;;  %s2581_s30 = sadd.s32 4294967295, %s2498_s29   ;;  %s2498_s29 = sphi %s2560_s29, %s30_s29   ;;  %s2494_s28 = sphi %s2558_s28, %s3341_s28   ;;  %s2490_s27 = sphi %s2556_s27, %s3340_s27   ;;  %s2486_s26 = sphi %s2554_s26, %s3336_s26   ;;  %s2482_s25 = sphi %s2552_s25, %s3339_s25   ;;  %s2478_s24 = sphi %s2550_s24, %s3338_s24  }
   0xe   : > { %3276 = sst [smem:[#allocation17_spill]] %s2498_s29  ;;  %s3257_s8 = sadd.s32 4294967294, %s2498_s29  }
   0xf   : > { %s49_s9 = sadd.s32 1, %s2494_s28  ;;  %s60_s10 = sadd.s32 1, %s2486_s26 }
  0x10   : > { %p51_p0 = scmp.ge.s32.totalorder %s49_s9, 2  ;;  %p67_p1 = scmp.ne.s32.totalorder %s2486_s26, %s2482_s25 }
  0x11   : > { %p68_p2 = scmp.eq.s32.totalorder %s2498_s29, 0  ;;  %p73_p3 = scmp.ne.s32.totalorder %s2482_s25, %s2478_s24 }
  0x12   : > { %s3343_s9 = smov (%p51_p0, %s49_s9), 0  ;;  %p74_p5 = scmp.eq.s32.totalorder %s2581_s30, 0 }
  0x13   : > { %3277 = sst [smem:[#allocation18_spill]] %s3343_s9  ;;  %p2593_p4 = por %p68_p2, %p67_p1 }
  0x14   : > { %s55_s12 = ssub.s32 %s2494_s28, %s3343_s9  ;;  %p204_p6 = scmp.eq.s32.totalorder %s2581_s30, 1 }
  0x15   : > { %p58_p7 = scmp.eq.s32.totalorder %s55_s12, 0  ;;  %p2601_p8 = por %p74_p5, %p73_p3 }
  0x16   : > { %p2605_p9 = por %p204_p6, %p67_p1  ;;  %p210_p10 = scmp.eq.s32.totalorder %s3257_s8, 1 }
  0x17   : > { %s3279_s13 = scalar_select %p2601_p8, 1, 0 }
  0x18   : > { %s3280_s14 = scalar_select %p2605_p9, 1, 0 }
  0x19   : > { %s2612_s15 = scalar_select %p58_p7, %s2486_s26, %s60_s10  }
  0x1a   : > { %p2614_p11 = por %p210_p10, %p73_p3  ;;  %p2103_p13 = scmp.lt.s32.totalorder %s2498_s29, 2 }
  0x1b   : > { %3281 = sst [smem:[#allocation19_spill]] %s2612_s15  ;;  %s2621_s17 = sand.u32 1, %s2486_s26  }
  0x1c   : > { %s3282_s16 = scalar_select %p2614_p11, 1, 0 }
  0x1d   : > { %p2625_p0 = pnand %p2103_p13, %p2593_p4  ;;  %s324_s19 = sand.u32 1, %s2498_s29  }
  0x1e   : > { %3283 = sst [smem:[#allocation20_spill]] %s3282_s16  ;;  %s1885_s20 = sshll.u32 %s2621_s17, 6 }
  0x1f   : > { %s1941_s21 = sshll.u32 %s2494_s28, 10  ;;  %s328_s22 = scalar_lea.vmem [#allocation5], %s1885_s20 }
  0x20   : > { %s335_s23 = sshll.u32 %s328_s22, 4  ;;  %s3285_s1 = sld [smem:[#allocation22_spill]]  ;;  %s2637_s23 = int_to_ptr.vmem [resolvable:$true] %s335_s23 }
  0x21   : > { %s2639_s11 = scalar_lea.sflag [#allocation6], %s324_s19  ;;  %p2645_p2 = pneg %p2625_p0 }
  0x26   : > { %s2635_s8 = scalar_lea.hbm %s3285_s1, %s1941_s21  ;;  %s2267_s22 = scalar_lea.hbm %s3285_s1, 2048 }
  0x27   : > { %s2262_s9 = scalar_lea.hbm %s2635_s8, 1024  ;;  %p2268_p5 = scmp.lt.u32.totalorder %s2635_s8, %s3285_s1 }
  0x28   : > { %p2263_p1 = scmp.ne.s32.totalorder %s2635_s8, %s2262_s9  ;;  %p2269_p6 = scmp.lt.u32.totalorder %s2267_s22, %s2262_s9 }
  0x29   : > { %p2271_p10 = scmp.lt.u32.totalorder %s2262_s9, %s2635_s8 }
  0x2a   : > { %p2265_p3 = pnand %p2645_p2, %p2263_p1  ;;  %p2270_p7 = por %p2269_p6, %p2268_p5 }
  0x2c   : > { %p2266_p4 = pneg %p2265_p3  ;;  %p2272_p13 = por %p2271_p10, %p2270_p7 }
  0x2e   : > { %p2273_p12 = pnand %p2272_p13, %p2266_p4 }
  0x30   : > { %2276 = shalt.err (!%p2273_p12)
}
  0x31   : > { %s2277_s19 = scalar_lea.vmem %s2637_s23, 1024  ;;  %s2500_s20 = smov [#allocation5]  }
  0x32   : > { %p2278_p1 = scmp.ne.s32.totalorder %s2637_s23, %s2277_s19  ;;  %s2282_s21 = sshll.u32 %s2500_s20, 4  ;;  %s2283_s21 = int_to_ptr.vmem [resolvable:$false] %s2282_s21 }
  0x33   : > { %s2284_s10 = scalar_lea.vmem %s2283_s21, 2048  ;;  %p2285_p9 = scmp.lt.s32.totalorder %s2637_s23, %s2283_s21 }
  0x34   : > { %p2280_p3 = pnand %p2278_p1, %p2645_p2  ;;  %p2286_p8 = scmp.lt.s32.totalorder %s2284_s10, %s2277_s19 }
  0x36   : > { %p2281_p11 = pneg %p2280_p3  ;;  %p2287_p5 = por %p2286_p8, %p2285_p9 }
  0x38   : > { %p2288_p6 = pnand %p2287_p5, %p2281_p11 }
  0x3a   : > { %2291 = shalt.err (!%p2288_p6)
}
  0x3b   : > { %s3263_s9 = smov 128   ;;  %s3265_s22 = smov 8  }
  0x3c   : > { %2089 = dma.hbm_to_vmem [thread:$0]  (!%p2625_p0), %s2635_s8, 1024, %s2637_s23, %s2639_s11, %s3263_s9, %s3263_s9, %s3265_s22  }
  0x3d   : > { %p1891_p8 = scmp.ge.s32.totalorder %s2498_s29, 1  ;;  %p367_p9 = scmp.lt.s32.totalorder %s2498_s29, 3 }
  0x3e   : > { %s1882_s19 = sshll.u32 %s2621_s17, 7  ;;  %s1940_s20 = sshll.u32 %s2494_s28, 11 }
  0x3f   : > { %p2674_p11 = pnand %p1891_p8, %p367_p9  ;;  %s3288_s0 = sld [smem:[#allocation21_spill]] }
  0x40   : > { %s304_s26 = scalar_lea.vmem [#allocation2], %s1882_s19  ;;  %s1888_s8 = sshll.u32 %s2621_s17, 4 }
  0x41   : > { %s3287_s12 = scalar_select %p2674_p11, 1, 0 }
  0x42   : > { %s314_s16 = sshll.u32 %s304_s26, 4  ;;  %s301_s23 = scalar_lea.sflag [#allocation3], %s2621_s17  ;;  %s2686_s16 = int_to_ptr.vmem [resolvable:$true] %s314_s16 }
  0x45   : > { %s2683_s1 = scalar_lea.hbm %s3288_s0, %s1940_s20  ;;  %s2297_s20 = scalar_lea.hbm %s3288_s0, 4096 }
  0x46   : > { %s2292_s9 = scalar_lea.hbm %s2683_s1, 2048  ;;  %p2298_p10 = scmp.lt.u32.totalorder %s2683_s1, %s3288_s0 }
  0x47   : > { %p2293_p12 = scmp.ne.s32.totalorder %s2683_s1, %s2292_s9  ;;  %p2299_p13 = scmp.lt.u32.totalorder %s2297_s20, %s2292_s9 }
  0x48   : > { %p2301_p3 = scmp.lt.u32.totalorder %s2292_s9, %s2683_s1 }
  0x49   : > { %p2295_p4 = pnand %p2293_p12, %p2645_p2  ;;  %p2300_p1 = por %p2299_p13, %p2298_p10 }
  0x4b   : > { %p2296_p7 = pneg %p2295_p4  ;;  %p2302_p5 = por %p2301_p3, %p2300_p1 }
  0x4d   : > { %p2303_p6 = pnand %p2302_p5, %p2296_p7 }
  0x4f   : > { %2306 = shalt.err (!%p2303_p6)
}
  0x50   : > { %s2307_s26 = scalar_lea.vmem %s2686_s16, 2048  ;;  %s2503_s29 = smov [#allocation2]  }
  0x51   : > { %p2308_p8 = scmp.ne.s32.totalorder %s2686_s16, %s2307_s26  ;;  %s2312_s22 = sshll.u32 %s2503_s29, 4  ;;  %s2313_s22 = int_to_ptr.vmem [resolvable:$false] %s2312_s22 }
  0x52   : > { %s2314_s19 = scalar_lea.vmem %s2313_s22, 4096  ;;  %p2315_p4 = scmp.lt.s32.totalorder %s2686_s16, %s2313_s22 }
  0x53   : > { %p2310_p9 = pnand %p2308_p8, %p2645_p2  ;;  %p2316_p11 = scmp.lt.s32.totalorder %s2314_s19, %s2307_s26 }
  0x55   : > { %p2311_p12 = pneg %p2310_p9  ;;  %p2317_p10 = por %p2316_p11, %p2315_p4 }
  0x57   : > { %p2318_p13 = pnand %p2317_p10, %p2311_p12 }
  0x59   : > { %2321 = shalt.err (!%p2318_p13)
}
  0x5a   : > { %s3289_s9 = smov 8   ;;  %s3290_s20 = smov 128  }
  0x5b   : > { %2086 = dma.hbm_to_vmem [thread:$0]  (!%p2625_p0), %s2683_s1, 2048, %s2686_s16, %s301_s23, %s3290_s20, %s3290_s20, %s3289_s9  }
  0x5c   : > { %s1942_s21 = sshll.u32 %s2494_s28, 8  ;;  %s349_s10 = scalar_lea.vmem [#allocation7], %s1888_s8 }
  0x5d   : > { %s359_s26 = sshll.u32 %s349_s10, 4  ;;  %s2721_s19 = scalar_lea.hbm %s3253_s4, %s1942_s21  ;;  %s2723_s26 = int_to_ptr.vmem [resolvable:$true] %s359_s26 }
  0x5e   : > { %s2322_s0 = scalar_lea.hbm %s2721_s19, 256  ;;  %s2327_s17 = scalar_lea.hbm %s3253_s4, 512 }
  0x5f   : > { %p2323_p11 = scmp.ne.s32.totalorder %s2721_s19, %s2322_s0  ;;  %p2328_p3 = scmp.lt.u32.totalorder %s2721_s19, %s3253_s4 }
  0x60   : > { %p2329_p5 = scmp.lt.u32.totalorder %s2327_s17, %s2322_s0  ;;  %p2331_p8 = scmp.lt.u32.totalorder %s2322_s0, %s2721_s19 }
  0x61   : > { %p2325_p7 = pnand %p2323_p11, %p2645_p2 }
  0x62   : > { %p2330_p6 = por %p2329_p5, %p2328_p3 }
  0x63   : > { %p2326_p1 = pneg %p2325_p7 }
  0x64   : > { %p2332_p9 = por %p2331_p8, %p2330_p6 }
  0x66   : > { %p2333_p12 = pnand %p2332_p9, %p2326_p1 }
  0x68   : > { %2336 = shalt.err (!%p2333_p12)
}
  0x69   : > { %s2337_s21 = scalar_lea.vmem %s2723_s26, 256  ;;  %s2504_s10 = smov [#allocation7]  }
  0x6a   : > { %p2338_p4 = scmp.ne.s32.totalorder %s2723_s26, %s2337_s21  ;;  %s2342_s29 = sshll.u32 %s2504_s10, 4  ;;  %s2343_s29 = int_to_ptr.vmem [resolvable:$false] %s2342_s29 }
  0x6b   : > { %s2344_s22 = scalar_lea.vmem %s2343_s29, 512  ;;  %p2345_p11 = scmp.lt.s32.totalorder %s2723_s26, %s2343_s29 }
  0x6c   : > { %p2340_p10 = pnand %p2338_p4, %p2645_p2  ;;  %p2346_p7 = scmp.lt.s32.totalorder %s2344_s22, %s2337_s21 }
  0x6e   : > { %p2341_p13 = pneg %p2340_p10  ;;  %p2347_p3 = por %p2346_p7, %p2345_p11 }
  0x70   : > { %p2348_p5 = pnand %p2347_p3, %p2341_p13 }
  0x72   : > { %2351 = shalt.err (!%p2348_p5)
}
  0x73   : > { %2092 = dma.hbm_to_vmem [thread:$0]  (!%p2625_p0), %s2721_s19, 256, %s2723_s26, %s2639_s11, %s3290_s20, %s3290_s20, %s3289_s9  }
  0x74   : > { %p3291_p2 = scmp.ne.s32.totalorder %s3287_s12, 0 }
  0x75   : > { %s2753_s0 = sand.u32 (!%p3291_p2), 1, %s2482_s25   ;;  %p3292_p1 = scmp.ne.s32.totalorder (!%p3291_p2), %s3279_s13, 0 }
  0x76   : > { %371 = sbr.rel (%p3291_p2) target bundleno = 715 (0x2cb), region = 40  ;;  %s1892_s15 = sshll.u32 (!%p3291_p2), %s2753_s0, 7 }
  0x77   : > { %s374_s1 = scalar_lea.sflag (!%p3291_p2), [#allocation3], %s2753_s0  ;;  %s2757_s16 = scalar_lea.vmem (!%p3291_p2), [#allocation2], %s1892_s15 }
  0x7d   : > { %2461 = dma.done.wait (%p3292_p1), %s374_s1, 2048  }
  0x7e   : > { %2463 = vsyncadd (%p3292_p1), %s374_s1, 4294965248  ;;  %s382_s18 = sand.u32 1, %s2581_s30   ;;  %s1893_s11 = sshll.u32 %s2753_s0, 6 }
  0x7f   : > { %s383_s12 = scalar_lea.sflag [#allocation6], %s382_s18  ;;  %s2767_s9 = scalar_lea.vmem [#allocation5], %s1893_s11 }
  0x80   : > { %2465 = dma.done.wait (%p3292_p1), %s383_s12, 1280  }
  0x81   : > { %2467 = vsyncadd (%p3292_p1), %s383_s12, 4294966016  ;;  %v2505_v0 = vmov 0.0   ;;  %vm2506_vm0 = vmmov 0   ;;  %v648_v1 = vld [vmem:[%s2767_s9] sm:$0xff]  ;;  %vm659_vm1 = vcmask 1043456   ;;  %v1912_v3 = vld [vmem:[%s2767_s9 + $0x8] sm:$0xff] }
  0x82   : > { %1975 = vmatprep.subr.bf16.mxu0 %v2505_v0  ;;  %1977 = vmatprep.mubr.msk.bf16.mxu0 %vm2506_vm0, %v2505_v0  ;;  %v649_v2 = vpack.c.bf16 %v648_v1, %v648_v1  ;;  %v756_v4 = vpack.c.bf16 %v1912_v3, %v1912_v3  ;;  %v2157_v6 = vld [vmem:[%s3251_s2] sm:$0xff]   ;;  %vm655_vm2 = vcmask 64512   ;;  %v1915_v8 = vld [vmem:[%s2767_s9 + $0x10] sm:$0xff]  ;;  %v1918_v11 = vld [vmem:[%s2767_s9 + $0x18] sm:$0xff]  ;;  %s1894_s17 = sshll.u32 %s2753_s0, 4  ;;  %s3058_s23 = scalar_lea.vmem [#allocation9], %s2753_s0 }
  0x83   : > { %1981 = vmatprep.subr.bf16.mxu1 %v2505_v0  ;;  %1983 = vmatprep.mubr.msk.bf16.mxu1 %vm2506_vm0, %v2505_v0  ;;  %v870_v9 = vpack.c.bf16 %v1915_v8, %v1915_v8  ;;  %v986_v12 = vpack.c.bf16 %v1918_v11, %v1918_v11  ;;  %v1921_v14 = vld [vmem:[%s2767_s9 + $0x20] sm:$0xff]  ;;  %v1924_v17 = vld [vmem:[%s2767_s9 + $0x28] sm:$0xff]  ;;  %v1927_v20 = vld [vmem:[%s2767_s9 + $0x30] sm:$0xff]  ;;  %s395_s8 = scalar_lea.vmem [#allocation7], %s1894_s17  ;;  %s436_s21 = scalar_lea.vmem [#allocation8], %s2753_s0 }
  0x84   : > { %v661_v5 = vsel %vm659_vm1, %v649_v2, 0  ;;  %v758_v7 = vsel %vm659_vm1, %v756_v4, 0  ;;  %v1102_v15 = vpack.c.bf16 %v1921_v14, %v1921_v14  ;;  %v1218_v18 = vpack.c.bf16 %v1924_v17, %v1924_v17  ;;  %v1930_v23 = vld [vmem:[%s2767_s9 + $0x38] sm:$0xff]  ;;  %v647_v26 = vld [vmem:[%s3252_s3] sm:$0xf]  ;;  %v2876_v14 = vld [vmem:[%s2757_s16 + $0x50] sm:$0xff] }
  0x85   : > { %1976 = vmatpush3.bf16.msra.mxu0 %v661_v5  ;;  %v872_v10 = vsel %vm659_vm1, %v870_v9, 0  ;;  %v988_v13 = vsel %vm659_vm1, %v986_v12, 0  ;;  %v1334_v21 = vpack.c.bf16 %v1927_v20, %v1927_v20  ;;  %v1450_v24 = vpack.c.bf16 %v1930_v23, %v1930_v23  ;;  %v466_v5 = vld [vmem:[%s2757_s16] sm:$0xff]  ;;  %v1896_v20 = vld [vmem:[%s2757_s16 + $0x18] sm:$0xff]  ;;  %s3073_s10 = scalar_lea.vmem [#allocation11], %s2753_s0  ;;  %s3079_s29 = sshll.u32 %s2490_s27, 4 }
  0x86   : > { %1987 = vmatprep.subr.bf16.mxu0 %v2505_v0  ;;  %v1104_v16 = vsel %vm659_vm1, %v1102_v15, 0  ;;  %v1220_v19 = vsel %vm659_vm1, %v1218_v18, 0  ;;  %v2831_v27 = vsel %vm659_vm1, %v647_v26, 0  ;;  %v1897_v8 = vld [vmem:[%s2757_s16 + $0x20] sm:$0xff]  ;;  %v2884_v18 = vld [vmem:[%s2757_s16 + $0x70] sm:$0xff]  ;;  %v1902_v26 = vld [vmem:[%s2757_s16 + $0x48] sm:$0xff]  ;;  %s3086_s1 = scalar_lea.hbm %s3254_s5, %s3079_s29 }
  0x87   : > { %v1336_v22 = vsel %vm659_vm1, %v1334_v21, 0  ;;  %v1452_v25 = vsel %vm659_vm1, %v1450_v24, 0  ;;  %1982 = vmatpush3.bf16.msra.mxu1 %v2831_v27  ;;  %v1901_v12 = vld [vmem:[%s2757_s16 + $0x40] sm:$0xff]  ;;  %v1898_v21 = vld [vmem:[%s2757_s16 + $0x28] sm:$0xff]  ;;  %v1900_v24 = vld [vmem:[%s2757_s16 + $0x38] sm:$0xff]  ;;  %s1629_s27 = scalar_lea.sflag [#allocation4], %s2753_s0 }
  0x88   : > { %1978 = vmatmul.mubr.msk.bf16.vlgmr.msra.gmra.mrb[0].mxu0 %vm655_vm2, %v2157_v6  ;;  %1993 = vmatprep.subr.bf16.mxu1 %v2505_v0  ;;  %p3325_p6 = scmp.ne.s32.totalorder %s3280_s14, 0  ;;  %s2507_s12 = smov [#allocation8]  }
  0x89   : > { %1988 = vmatpush3.bf16.msra.mxu0 %v758_v7  ;;  %1989 = vmatprep.mubr.msk.bf16.mxu0 %vm2506_vm0, %v2505_v0  ;;  %s2356_s9 = sshll.u32 %s2507_s12, 4  ;;  %s2357_s9 = int_to_ptr.vmem [resolvable:$false] %s2356_s9 }
  0x8a   : > { %1999 = vmatprep.subr.bf16.mxu0 %v2505_v0  ;;  %s2358_s13 = scalar_lea.vmem %s2357_s9, 32 }
  0x90   : > { %1990 = vmatmul.mubr.msk.bf16.vlgmr.msra.gmra.mrb[4].mxu0 %vm655_vm2, %v2157_v6 }
  0x91   : > { %2000 = vmatpush3.bf16.msra.mxu0 %v872_v10  ;;  %2001 = vmatprep.mubr.msk.bf16.mxu0 %vm2506_vm0, %v2505_v0  ;;  %v1899_v10 = vld [vmem:[%s2757_s16 + $0x30] sm:$0xff] }
  0x92   : > { %2011 = vmatprep.subr.bf16.mxu0 %v2505_v0 }
  0x98   : > { %2002 = vmatmul.mubr.msk.bf16.vlgmr.msra.gmra.mrb[8].mxu0 %vm655_vm2, %v2157_v6 }
  0x99   : > { %2012 = vmatpush3.bf16.msra.mxu0 %v988_v13  ;;  %2013 = vmatprep.mubr.msk.bf16.mxu0 %vm2506_vm0, %v2505_v0 }
  0x9a   : > { %2023 = vmatprep.subr.bf16.mxu0 %v2505_v0 }
  0xa0   : > { %2014 = vmatmul.mubr.msk.bf16.vlgmr.msra.gmra.mrb[12].mxu0 %vm655_vm2, %v2157_v6 }
  0xa1   : > { %2024 = vmatpush3.bf16.msra.mxu0 %v1104_v16  ;;  %2025 = vmatprep.mubr.msk.bf16.mxu0 %vm2506_vm0, %v2505_v0  ;;  %v2880_v16 = vld [vmem:[%s2757_s16 + $0x60] sm:$0xff] }
  0xa2   : > { %2035 = vmatprep.subr.bf16.mxu0 %v2505_v0 }
  0xa8   : > { %2026 = vmatmul.mubr.msk.bf16.vlgmr.msra.gmra.mrb[16].mxu0 %vm655_vm2, %v2157_v6 }
  0xa9   : > { %2036 = vmatpush3.bf16.msra.mxu0 %v1220_v19  ;;  %2037 = vmatprep.mubr.msk.bf16.mxu0 %vm2506_vm0, %v2505_v0  ;;  %v467_v19 = vld [vmem:[%s2757_s16 + $0x8] sm:$0xff] }
  0xaa   : > { %2047 = vmatprep.subr.bf16.mxu0 %v2505_v0  ;;  %v472_v23 = vmax.f32 %v467_v19, %v1896_v20 }
  0xb0   : > { %2038 = vmatmul.mubr.msk.bf16.vlgmr.msra.gmra.mrb[20].mxu0 %vm655_vm2, %v2157_v6 }
  0xb1   : > { %2048 = vmatpush3.bf16.msra.mxu0 %v1336_v22  ;;  %2049 = vmatprep.mubr.msk.bf16.mxu0 %vm2506_vm0, %v2505_v0 }
  0xb2   : > { %2059 = vmatprep.subr.bf16.mxu0 %v2505_v0 }
  0xb8   : > { %2050 = vmatmul.mubr.msk.bf16.vlgmr.msra.gmra.mrb[24].mxu0 %vm655_vm2, %v2157_v6 }
  0xb9   : > { %2060 = vmatpush3.bf16.msra.mxu0 %v1452_v25  ;;  %2061 = vmatprep.mubr.msk.bf16.mxu0 %vm2506_vm0, %v2505_v0  ;;  %v477_v25 = vmax.f32 %v472_v23, %v1898_v21 }
  0xc0   : > { %2062 = vmatmul.mubr.msk.bf16.vlgmr.msra.gmra.mrb[28].mxu0 %vm655_vm2, %v2157_v6  ;;  %v1895_v6 = vld [vmem:[%s2757_s16 + $0x10] sm:$0xff] }
  0xc1   : > { %v471_v7 = vmax.f32 %v466_v5, %v1895_v6 }
  0xc3   : > { %v476_v9 = vmax.f32 %v471_v7, %v1897_v8 }
  0xc5   : > { %v481_v11 = vmax.f32 %v476_v9, %v1899_v10 }
  0xc7   : > { %v486_v13 = vmax.f32 %v481_v11, %v1901_v12 }
  0xc9   : > { %v491_v15 = vmax.f32 %v486_v13, %v2876_v14 }
  0xcb   : > { %v496_v17 = vmax.f32 %v491_v15, %v2880_v16 }
  0xcd   : > { %v2890_v22 = vmax.f32 %v496_v17, %v2884_v18 }
  0xcf   : > { %v583_v7 = vsub.f32 %v2876_v14, %v2890_v22 }
  0xd1   : > { %v585_v14 = vmul.f32 1.442695, %v583_v7 }
 0x15b   : > { %v697_v28 = vpop.f32.mrb[0].mxu0 }
 0x15c   : > { %v1979_v29 = vpop.f32.mrb[1].mxu0 }
 0x15d   : > { %v700_v30 = vpop.f32.mrb[2].mxu0  ;;  %v519_v29 = vsub.f32 %v1895_v6, %v2890_v22 }
 0x15e   : > { %v704_v31 = vpack.c.bf16 %v700_v30, %v697_v28  ;;  %v1980_v32 = vpop.f32.mrb[3].mxu0  ;;  %v482_v28 = vmax.f32 %v477_v25, %v1900_v24  ;;  %v2897_v30 = vld [vmem:[%s2757_s16 + $0x58] sm:$0xff] }
 0x15f   : > { %v2900_v32 = vld [vmem:[%s2757_s16 + $0x68] sm:$0xff] }
 0x160   : > { %1984 = vmatmul.mubr.msk.bf16.vlgmr.msra.gmra.mrb[0].mxu1 %vm655_vm2, %v704_v31  ;;  %v487_v31 = vmax.f32 %v482_v28, %v1902_v26 }
 0x161   : > { %1994 = vmatpush3.bf16.msra.mxu1 %v2831_v27  ;;  %1995 = vmatprep.mubr.msk.bf16.mxu1 %vm2506_vm0, %v2505_v0 }
 0x162   : > { %2005 = vmatprep.subr.bf16.mxu1 %v2505_v0 }
 0x163   : > { %v794_v33 = vpop.f32.mrb[4].mxu0 }
 0x164   : > { %v1991_v34 = vpop.f32.mrb[5].mxu0 }
 0x165   : > { %v797_v35 = vpop.f32.mrb[6].mxu0  ;;  %v492_v34 = vmax.f32 %v487_v31, %v2897_v30 }
 0x166   : > { %v801_v36 = vpack.c.bf16 %v797_v35, %v794_v33  ;;  %v1992_v37 = vpop.f32.mrb[7].mxu0  ;;  %v521_v35 = vmul.f32 1.442695, %v519_v29 }
 0x167   : > { %v535_v37 = vsub.f32 %v1897_v8, %v2890_v22 }
 0x168   : > { %1996 = vmatmul.mubr.msk.bf16.vlgmr.msra.gmra.mrb[4].mxu1 %vm655_vm2, %v801_v36  ;;  %v2904_v36 = vld [vmem:[%s2757_s16 + $0x78] sm:$0xff]  ;;  %s1650_s16 = sshll.u32 %s436_s21, 4  ;;  %s3090_s16 = int_to_ptr.vmem [resolvable:$true] %s1650_s16 }
 0x169   : > { %2006 = vmatpush3.bf16.msra.mxu1 %v2831_v27  ;;  %2007 = vmatprep.mubr.msk.bf16.mxu1 %vm2506_vm0, %v2505_v0  ;;  %s2352_s11 = scalar_lea.vmem %s3090_s16, 16  ;;  %p2359_p12 = scmp.lt.s32.totalorder %s3090_s16, %s2357_s9 }
 0x16a   : > { %2017 = vmatprep.subr.bf16.mxu1 %v2505_v0  ;;  %p2353_p0 = scmp.ne.s32.totalorder %s3090_s16, %s2352_s11  ;;  %p2360_p4 = scmp.lt.s32.totalorder %s2358_s13, %s2352_s11 }
 0x16b   : > { %v908_v38 = vpop.f32.mrb[8].mxu0 }
 0x16c   : > { %v2003_v39 = vpop.f32.mrb[9].mxu0  ;;  %p2354_p8 = pnand %p2353_p0, %p3325_p6  ;;  %p2361_p10 = por %p2360_p4, %p2359_p12 }
 0x16d   : > { %v911_v40 = vpop.f32.mrb[10].mxu0 }
 0x16e   : > { %v915_v41 = vpack.c.bf16 %v911_v40, %v908_v38  ;;  %v2004_v42 = vpop.f32.mrb[11].mxu0  ;;  %v497_v38 = vmax.f32 %v492_v34, %v2900_v32  ;;  %v537_v40 = vmul.f32 1.442695, %v535_v37  ;;  %p2355_p9 = pneg %p2354_p8 }
 0x170   : > { %2008 = vmatmul.mubr.msk.bf16.vlgmr.msra.gmra.mrb[8].mxu1 %vm655_vm2, %v915_v41  ;;  %v2909_v39 = vmax.f32 %v497_v38, %v2904_v36  ;;  %p2362_p13 = pnand %p2361_p10, %p2355_p9 }
 0x171   : > { %2018 = vmatpush3.bf16.msra.mxu1 %v2831_v27  ;;  %2019 = vmatprep.mubr.msk.bf16.mxu1 %vm2506_vm0, %v2505_v0 }
 0x172   : > { %2029 = vmatprep.subr.bf16.mxu1 %v2505_v0  ;;  %v504_v41 = vsub.f32 %v467_v19, %v2909_v39  ;;  %v520_v42 = vsub.f32 %v1896_v20, %v2909_v39 }
 0x173   : > { %v1024_v43 = vpop.f32.mrb[12].mxu0 }
 0x174   : > { %v2015_v44 = vpop.f32.mrb[13].mxu0 }
 0x175   : > { %v1027_v45 = vpop.f32.mrb[14].mxu0  ;;  %v551_v44 = vsub.f32 %v1899_v10, %v2890_v22 }
 0x176   : > { %v1031_v46 = vpack.c.bf16 %v1027_v45, %v1024_v43  ;;  %v2016_v47 = vpop.f32.mrb[15].mxu0  ;;  %v536_v43 = vsub.f32 %v1898_v21, %v2909_v39  ;;  %v552_v45 = vsub.f32 %v1900_v24, %v2909_v39 }
 0x177   : > { %v523_v47 = vmul.f32 1.442695, %v520_v42  ;;  %v600_v42 = vsub.f32 %v2900_v32, %v2909_v39 }
 0x178   : > { %2020 = vmatmul.mubr.msk.bf16.vlgmr.msra.gmra.mrb[12].mxu1 %vm655_vm2, %v1031_v46  ;;  %v507_v46 = vmul.f32 1.442695, %v504_v41 }
 0x179   : > { %2030 = vmatpush3.bf16.msra.mxu1 %v2831_v27  ;;  %2031 = vmatprep.mubr.msk.bf16.mxu1 %vm2506_vm0, %v2505_v0 }
 0x17a   : > { %2041 = vmatprep.subr.bf16.mxu1 %v2505_v0 }
 0x17b   : > { %v1140_v48 = vpop.f32.mrb[16].mxu0 }
 0x17c   : > { %v2027_v49 = vpop.f32.mrb[17].mxu0 }
 0x17d   : > { %v1143_v50 = vpop.f32.mrb[18].mxu0  ;;  %v553_v49 = vmul.f32 1.442695, %v551_v44 }
 0x17e   : > { %v1147_v51 = vpack.c.bf16 %v1143_v50, %v1140_v48  ;;  %v2028_v52 = vpop.f32.mrb[19].mxu0  ;;  %v539_v48 = vmul.f32 1.442695, %v536_v43  ;;  %v567_v50 = vsub.f32 %v1901_v12, %v2890_v22 }
 0x17f   : > { %v555_v52 = vmul.f32 1.442695, %v552_v45 }
 0x180   : > { %2032 = vmatmul.mubr.msk.bf16.vlgmr.msra.gmra.mrb[16].mxu1 %vm655_vm2, %v1147_v51  ;;  %v2918_v51 = vld [vmem:[%s395_s8] sm:$0xff] }
 0x181   : > { %2042 = vmatpush3.bf16.msra.mxu1 %v2831_v27  ;;  %2043 = vmatprep.mubr.msk.bf16.mxu1 %vm2506_vm0, %v2505_v0  ;;  %v559_v15 = vand.u32 8, %v2918_v51 }
 0x182   : > { %2053 = vmatprep.subr.bf16.mxu1 %v2505_v0 }
 0x183   : > { %v1256_v53 = vpop.f32.mrb[20].mxu0  ;;  %vm2971_vm9 = vcmp.ne.s32.totalorder %v559_v15, 0 }
 0x184   : > { %v2039_v54 = vpop.f32.mrb[21].mxu0 }
 0x185   : > { %v1259_v55 = vpop.f32.mrb[22].mxu0 }
 0x186   : > { %v1263_v56 = vpack.c.bf16 %v1259_v55, %v1256_v53  ;;  %v2040_v57 = vpop.f32.mrb[23].mxu0  ;;  %v2920_v53 = vld [vmem:[%s395_s8 + $0x8] sm:$0xff]  ;;  %v511_v55 = vand.u32 1, %v2918_v51 }
 0x187   : > { %v569_v57 = vmul.f32 1.442695, %v567_v50  ;;  %v560_v23 = vand.u32 8, %v2920_v53  ;;  %v576_v38 = vand.u32 16, %v2920_v53  ;;  %v616_v50 = vsub.f32 %v2904_v36, %v2909_v39 }
 0x188   : > { %2044 = vmatmul.mubr.msk.bf16.vlgmr.msra.gmra.mrb[20].mxu1 %vm655_vm2, %v1263_v56  ;;  %v527_v56 = vand.u32 2, %v2918_v51  ;;  %vm2928_vm3 = vcmp.ne.s32.totalorder %v511_v55, 0 }
 0x189   : > { %2054 = vmatpush3.bf16.msra.mxu1 %v2831_v27  ;;  %2055 = vmatprep.mubr.msk.bf16.mxu1 %vm2506_vm0, %v2505_v0  ;;  %vm2976_vm10 = vcmp.ne.s32.totalorder %v560_v23, 0  ;;  %vm2997_vm12 = vcmp.ne.s32.totalorder %v576_v38, 0 }
 0x18a   : > { %2065 = vmatprep.subr.bf16.mxu1 %v2505_v0  ;;  %vm2932_vm4 = vcmp.ne.s32.totalorder %v527_v56, 0 }
 0x18b   : > { %v1372_v58 = vpop.f32.mrb[24].mxu0 }
 0x18c   : > { %v2051_v59 = vpop.f32.mrb[25].mxu0 }
 0x18d   : > { %v1375_v60 = vpop.f32.mrb[26].mxu0  ;;  %v568_v59 = vsub.f32 %v1902_v26, %v2909_v39  ;;  %v584_v26 = vsub.f32 %v2897_v30, %v2909_v39  ;;  %v599_v30 = vsub.f32 %v2880_v16, %v2890_v22  ;;  %v603_v16 = vmul.f32 1.442695, %v600_v42 }
 0x18e   : > { %v1379_v61 = vpack.c.bf16 %v1375_v60, %v1372_v58  ;;  %v2052_v62 = vpop.f32.mrb[27].mxu0  ;;  %v512_v60 = vand.u32 1, %v2920_v53  ;;  %v592_v39 = vand.u32 32, %v2920_v53 }
 0x18f   : > { %v543_v62 = vand.u32 4, %v2918_v51  ;;  %v587_v34 = vmul.f32 1.442695, %v584_v26 }
 0x190   : > { %2056 = vmatmul.mubr.msk.bf16.vlgmr.msra.gmra.mrb[24].mxu1 %vm655_vm2, %v1379_v61  ;;  %v528_v61 = vand.u32 2, %v2920_v53  ;;  %vm2943_vm5 = vcmp.ne.s32.totalorder %v512_v60, 0  ;;  %vm3014_vm14 = vcmp.ne.s32.totalorder %v592_v39, 0 }
 0x191   : > { %2066 = vmatpush3.bf16.msra.mxu1 %v2831_v27  ;;  %2067 = vmatprep.mubr.msk.bf16.mxu1 %vm2506_vm0, %v2505_v0  ;;  %v503_v27 = vsub.f32 %v466_v5, %v2890_v22  ;;  %vm2953_vm7 = vcmp.ne.s32.totalorder %v543_v62, 0 }
 0x192   : > { %vm2947_vm6 = vcmp.ne.s32.totalorder %v528_v61, 0 }
 0x193   : > { %v1488_v63 = vpop.f32.mrb[28].mxu0  ;;  %v505_v33 = vmul.f32 1.442695, %v503_v27 }
 0x194   : > { %v2063_v1 = vpop.f32.mrb[29].mxu0 }
 0x195   : > { %v1491_v2 = vpop.f32.mrb[30].mxu0  ;;  %2158 = vpow2.f32 %v505_v33  ;;  %v575_v33 = vand.u32 16, %v2918_v51 }
 0x196   : > { %v1495_v3 = vpack.c.bf16 %v1491_v2, %v1488_v63  ;;  %v2064_v4 = vpop.f32.mrb[31].mxu0  ;;  %2160 = vpow2.f32 %v521_v35  ;;  %v571_v63 = vmul.f32 1.442695, %v568_v59 }
 0x197   : > { %2162 = vpow2.f32 %v537_v40  ;;  %vm2989_vm11 = vcmp.ne.s32.totalorder %v575_v33, 0  ;;  %v624_v33 = vand.u32 128, %v2920_v53 }
 0x198   : > { %2068 = vmatmul.mubr.msk.bf16.vlgmr.msra.gmra.mrb[28].mxu1 %vm655_vm2, %v1495_v3  ;;  %2164 = vpow2.f32 %v507_v46  ;;  %v544_v3 = vand.u32 4, %v2920_v53  ;;  %v601_v46 = vmul.f32 1.442695, %v599_v30 }
 0x199   : > { %2166 = vpow2.f32 %v523_v47  ;;  %vm3041_vm2 = vcmp.ne.s32.totalorder %v624_v33, 0 }
 0x19a   : > { %2168 = vpow2.f32 %v539_v48  ;;  %vm2960_vm8 = vcmp.ne.s32.totalorder %v544_v3, 0  ;;  %v607_v3 = vand.u32 64, %v2918_v51 }
 0x19b   : > { %2170 = vpow2.f32 %v553_v49  ;;  %v615_v49 = vsub.f32 %v2884_v18, %v2890_v22  ;;  %v619_v22 = vmul.f32 1.442695, %v616_v50 }
 0x19c   : > { %2172 = vpow2.f32 %v555_v52  ;;  %vm3022_vm15 = vcmp.ne.s32.totalorder %v607_v3, 0 }
 0x19d   : > { %2174 = vpow2.f32 %v569_v57  ;;  %v617_v57 = vmul.f32 1.442695, %v615_v49 }
 0x19e   : > { %2176 = vpow2.f32 %v571_v63 }
 0x19f   : > { %v2159_v54 = vpop.eup %2158  ;;  %2178 = vpow2.f32 %v585_v14 }
 0x1a0   : > { %v2161_v58 = vpop.eup %2160  ;;  %v515_v5 = vsel %vm2928_vm3, %v2159_v54, 0.0  ;;  %2180 = vpow2.f32 %v587_v34 }
 0x1a1   : > { %v2163_v4 = vpop.eup %2162  ;;  %v531_v6 = vsel %vm2932_vm4, %v2161_v58, 0.0  ;;  %v525_v44 = vadd.f32 %v2161_v58, %v2159_v54  ;;  %v591_v54 = vand.u32 32, %v2918_v51  ;;  %2182 = vpow2.f32 %v601_v46 }
 0x1a2   : > { %v2165_v8 = vpop.eup %2164  ;;  %v533_v19 = vadd.f32 %v531_v6, %v515_v5  ;;  %v547_v25 = vsel %vm2953_vm7, %v2163_v4, 0.0  ;;  %2184 = vpow2.f32 %v603_v16 }
 0x1a3   : > { %v2167_v11 = vpop.eup %2166  ;;  %v516_v12 = vsel %vm2943_vm5, %v2165_v8, 0.0  ;;  %2186 = vpow2.f32 %v617_v57  ;;  %vm3007_vm13 = vcmp.ne.s32.totalorder %v591_v54, 0  ;;  %v541_v61 = vadd.f32 %v2163_v4, %v525_v44 }
 0x1a4   : > { %v2169_v17 = vpop.eup %2168  ;;  %v532_v20 = vsel %vm2947_vm6, %v2167_v11, 0.0  ;;  %v549_v35 = vadd.f32 %v547_v25, %v533_v19  ;;  %v526_v36 = vadd.f32 %v2167_v11, %v2165_v8  ;;  %2188 = vpow2.f32 %v619_v22 }
 0x1a5   : > { %v534_v24 = vadd.f32 %v532_v20, %v516_v12  ;;  %v2171_v27 = vpop.eup %2170  ;;  %v548_v28 = vsel %vm2960_vm8, %v2169_v17, 0.0  ;;  %v608_v8 = vand.u32 64, %v2920_v53  ;;  %v623_v19 = vand.u32 128, %v2918_v51 }
 0x1a6   : > { %v2173_v29 = vpop.eup %2172  ;;  %v563_v41 = vsel %vm2971_vm9, %v2171_v27, 0.0  ;;  %v557_v5 = vadd.f32 %v2171_v27, %v541_v61  ;;  %v542_v11 = vadd.f32 %v2169_v17, %v526_v36  ;;  %v3319_v17 = vmov 0 }
 0x1a7   : > { %v550_v40 = vadd.f32 %v548_v28, %v534_v24  ;;  %v2175_v43 = vpop.eup %2174  ;;  %v564_v45 = vsel %vm2976_vm10, %v2173_v29, 0.0  ;;  %v565_v52 = vadd.f32 %v563_v41, %v549_v35  ;;  %v3317_v24 = vmov 0 }
 0x1a8   : > { %v2177_v47 = vpop.eup %2176  ;;  %v579_v56 = vsel %vm2989_vm11, %v2175_v43, 0.0  ;;  %v573_v15 = vadd.f32 %v2175_v43, %v557_v5  ;;  %v558_v20 = vadd.f32 %v2173_v29, %v542_v11  ;;  %v3318_v24 = vsel %vm3022_vm15, 4294967295, %v3317_v24 }
 0x1a9   : > { %v566_v55 = vadd.f32 %v564_v45, %v550_v40  ;;  %v580_v18 = vsel %vm2997_vm12, %v2177_v47, 0.0  ;;  %v2179_v58 = vpop.eup %2178  ;;  %v581_v59 = vadd.f32 %v579_v56, %v565_v52  ;;  %vm3028_vm0 = vcmp.ne.s32.totalorder %v608_v8, 0 }
 0x1aa   : > { %v595_v63 = vsel %vm3007_vm13, %v2179_v58, 0.0  ;;  %v2181_v6 = vpop.eup %2180  ;;  %v589_v25 = vadd.f32 %v2179_v58, %v573_v15  ;;  %v3320_v17 = vsel %vm3028_vm0, 4294967295, %v3319_v17  ;;  %v574_v28 = vadd.f32 %v2177_v47, %v558_v20 }
 0x1ab   : > { %v582_v62 = vadd.f32 %v580_v18, %v566_v55  ;;  %v597_v12 = vadd.f32 %v595_v63, %v581_v59  ;;  %v596_v4 = vsel %vm3014_vm14, %v2181_v6, 0.0  ;;  %v2183_v23 = vpop.eup %2182  ;;  %vm3035_vm1 = vcmp.ne.s32.totalorder %v623_v19, 0 }
 0x1ac   : > { %v2185_v26 = vpop.eup %2184  ;;  %v611_v27 = vsel %vm3022_vm15, %v2183_v23, 0.0  ;;  %v605_v35 = vadd.f32 %v2183_v23, %v589_v25  ;;  %v3321_v40 = vmov 0  ;;  %v590_v41 = vadd.f32 %v2181_v6, %v574_v28 }
 0x1ad   : > { %v598_v14 = vadd.f32 %v596_v4, %v582_v62  ;;  %v613_v34 = vadd.f32 %v611_v27, %v597_v12  ;;  %v612_v29 = vsel %vm3028_vm0, %v2185_v26, 0.0  ;;  %v2187_v38 = vpop.eup %2186  ;;  %v3322_v40 = vsel %vm3035_vm1, 4294967295, %v3321_v40 }
 0x1ae   : > { %v621_v42 = vadd.f32 %v2187_v38, %v605_v35  ;;  %v627_v43 = vsel %vm3035_vm1, %v2187_v38, 0.0  ;;  %v2189_v44 = vpop.eup %2188  ;;  %v606_v46 = vadd.f32 %v2185_v26, %v590_v41  ;;  %v3323_v47 = vmov 0 }
 0x1af   : > { %v614_v30 = vadd.f32 %v612_v29, %v598_v14  ;;  %v629_v45 = vadd.f32 %v627_v43, %v613_v34  ;;  %v3324_v47 = vsel %vm3041_vm2, 4294967295, %v3323_v47  ;;  %v628_v16 = vsel %vm3041_vm2, %v2189_v44, 0.0 }
 0x1b0   : > { %2190 = vlog2.f32 %v621_v42  ;;  %v622_v50 = vadd.f32 %v2189_v44, %v606_v46  ;;  %vm464_vm1 = vcmp.ne.s32.totalorder %v2918_v51, 0  ;;  %vm465_vm0 = vcmp.ne.s32.totalorder %v2920_v53, 0 }
 0x1b1   : > { %v635_v49 = vmax.f32 %v629_v45, 1e-30  ;;  %v630_v52 = vadd.f32 %v628_v16, %v614_v30  ;;  %v1933_v58 = vsel %vm464_vm1, 1.0, %v2505_v0  ;;  %v1934_v59 = vsel %vm465_vm0, 1.0, %v2505_v0 }
 0x1b2   : > { %vm1587_vm2 = vcmask 130048   ;;  %vm1582_vm15 = vcmask 122880  }
 0x1b3   : > { %2192 = vlog2.f32 %v635_v49  ;;  %v636_v54 = vmax.f32 %v630_v52, 1e-30  ;;  %v1605_v63 = vsel %vm1587_vm2, %v1933_v58, 0.0  ;;  %v1606_v3 = vsel %vm1587_vm2, %v1934_v59, 0.0  ;;  %1585 = vst.msk [vmem:[%s3058_s23] sm:$0x1] %vm1582_vm15, %v2505_v0 }
 0x1b4   : > { %2194 = vlog2.f32 %v622_v50  ;;  %v1607_v12 = vadd.f32 %v1606_v3, %v1605_v63  ;;  %1583 = vst.msk [vmem:[%s436_s21] sm:$0x1] %vm1582_vm15, %v2505_v0  ;;  %1584 = vst.msk [vmem:[%s3073_s10] sm:$0x1] %vm1582_vm15, %v2505_v0 }
 0x1b5   : > { %2196 = vlog2.f32 %v636_v54 }
 0x1b6   : > { %v1608_v14 = vrot.slane %v1607_v12, 4 }
 0x1b8   : > { %v1609_v20 = vadd.f32 %v1608_v14, %v1607_v12 }
 0x1ba   : > { %v2191_v55 = vpop.eup %2190  ;;  %v1610_v25 = vrot.slane %v1609_v20, 2 }
 0x1bb   : > { %v632_v56 = vmul.f32 0.6931472, %v2191_v55  ;;  %v1586_v35 = vld [vmem:[%s436_s21] sm:$0x1] }
 0x1bc   : > { %v1611_v27 = vadd.f32 %v1610_v25, %v1609_v20  ;;  %v1600_v38 = vld [vmem:[%s3073_s10] sm:$0x1] }
 0x1bd   : > { %v2193_v57 = vpop.eup %2192 }
 0x1be   : > { %v2195_v18 = vpop.eup %2194  ;;  %v638_v22 = vmul.f32 0.6931472, %v2193_v57  ;;  %v1612_v33 = vrot.slane %v1611_v27, 1 }
 0x1bf   : > { %v2197_v36 = vpop.eup %2196  ;;  %v634_v39 = vmul.f32 0.6931472, %v2195_v18 }
 0x1c0   : > { %v641_v61 = vsub.f32 %v632_v56, %v638_v22  ;;  %v640_v62 = vmul.f32 0.6931472, %v2197_v36  ;;  %v1613_v29 = vadd.f32 %v1612_v33, %v1611_v27 }
 0x1c2   : > { %v643_v5 = vsel %vm464_vm1, %v641_v61, 0.0  ;;  %v642_v6 = vsub.f32 %v634_v39, %v640_v62  ;;  %v1614_v41 = vadd.f32 %v1613_v29, %v1600_v38 }
 0x1c3   : > { %v1588_v8 = vsel %vm1587_vm2, %v643_v5, 0.0 }
 0x1c4   : > { %v644_v11 = vsel %vm465_vm0, %v642_v6, 0.0  ;;  %1615 = vst.msk [vmem:[%s3073_s10] sm:$0x1] %vm1582_vm15, %v1614_v41 }
 0x1c5   : > { %v1589_v4 = vsel %vm1587_vm2, %v644_v11, 0.0 }
 0x1c6   : > { %v1590_v15 = vadd.f32 %v1589_v4, %v1588_v8 }
 0x1c8   : > { %v1591_v19 = vrot.slane %v1590_v15, 4 }
 0x1ca   : > { %v1592_v23 = vadd.f32 %v1591_v19, %v1590_v15 }
 0x1cc   : > { %v1593_v26 = vrot.slane %v1592_v23, 2 }
 0x1ce   : > { %v1594_v28 = vadd.f32 %v1593_v26, %v1592_v23 }
 0x1d0   : > { %v1595_v34 = vrot.slane %v1594_v28, 1 }
 0x1d2   : > { %v1596_v30 = vadd.f32 %v1595_v34, %v1594_v28 }
 0x1d4   : > { %v1597_v42 = vadd.f32 %v1596_v30, %v1586_v35 }
 0x1d6   : > { %1599 = vst.msk [vmem:[%s436_s21] sm:$0x1] %vm1582_vm15, %v1597_v42 }
 0x1d7   : > { %2365 = shalt.err (!%p2362_p13)
}
 0x1d8   : > { %s2366_s0 = scalar_lea.hbm %s3086_s1, 16  ;;  %s2370_s19 = scalar_lea.hbm %s3254_s5, 32 }
 0x1d9   : > { %p2367_p11 = scmp.ne.s32.totalorder %s3086_s1, %s2366_s0  ;;  %p2371_p5 = scmp.lt.u32.totalorder %s3086_s1, %s3254_s5 }
 0x1da   : > { %p2372_p2 = scmp.lt.u32.totalorder %s2370_s19, %s2366_s0  ;;  %p2374_p0 = scmp.lt.u32.totalorder %s2366_s0, %s3086_s1 }
 0x1db   : > { %p2368_p7 = pnand %p2367_p11, %p3325_p6 }
 0x1dc   : > { %p2373_p1 = por %p2372_p2, %p2371_p5 }
 0x1dd   : > { %p2369_p3 = pneg %p2368_p7 }
 0x1de   : > { %p2375_p8 = por %p2374_p0, %p2373_p1 }
 0x1e0   : > { %p2376_p9 = pnand %p2375_p8, %p2369_p3 }
 0x1e2   : > { %2379 = shalt.err (!%p2376_p9)
}
 0x1e3   : > { %2077 = dma.vmem_to_hbm [thread:$0]  (%p3325_p6), %s3090_s16, 16, %s3086_s1, %s1629_s27   ;;  %v752_v19 = vsel %vm2928_vm3, 1.0, %v2505_v0  ;;  %v753_v27 = vsel %vm2943_vm5, 1.0, %v2505_v0  ;;  %vm3326_vm3 = vnez %v3318_v24  ;;  %vm3328_vm5 = vnez %v3322_v40 }
 0x1e4   : > { %s1664_s21 = sshll.u32 %s3058_s23, 4  ;;  %s1678_s22 = sshll.u32 %s3073_s10, 4  ;;  %s3164_s21 = int_to_ptr.vmem [resolvable:$true] %s1664_s21  ;;  %s3172_s22 = int_to_ptr.vmem [resolvable:$true] %s1678_s22 }
 0x1e5   : > { %s3162_s16 = scalar_lea.hbm %s3255_s6, %s3079_s29  ;;  %s3170_s12 = scalar_lea.hbm %s3256_s7, %s3079_s29 }
 0x1e6   : > { %s3178_s10 = scalar_lea.sflag [#allocation10], %s382_s18  ;;  %s2380_s9 = scalar_lea.vmem %s3164_s21, 16 }
 0x1e7   : > { %p2381_p12 = scmp.ne.s32.totalorder %s3164_s21, %s2380_s9  ;;  %s2508_s13 = smov [#allocation9]  }
 0x1e8   : > { %s2384_s0 = sshll.u32 %s2508_s13, 4  ;;  %s2385_s0 = int_to_ptr.vmem [resolvable:$false] %s2384_s0 }
 0x1e9   : > { %p2382_p4 = pnand %p2381_p12, %p3325_p6  ;;  %s2386_s20 = scalar_lea.vmem %s2385_s0, 32 }
 0x1ea   : > { %p2387_p13 = scmp.lt.s32.totalorder %s3164_s21, %s2385_s0  ;;  %p2388_p11 = scmp.lt.s32.totalorder %s2386_s20, %s2380_s9 }
 0x1eb   : > { %p2383_p10 = pneg %p2382_p4 }
 0x1ec   : > { %p2389_p7 = por %p2388_p11, %p2387_p13 }
 0x1ee   : > { %p2390_p3 = pnand %p2389_p7, %p2383_p10 }
 0x233   : > { %v745_v43 = vpop.f32.mrb[0].mxu1 }
 0x234   : > { %v1985_v44 = vpop.f32.mrb[1].mxu1 }
 0x235   : > { %v748_v45 = vpop.f32.mrb[2].mxu1 }
 0x236   : > { %v1986_v46 = vpop.f32.mrb[3].mxu1 }
 0x23b   : > { %v839_v16 = vpop.f32.mrb[4].mxu1 }
 0x23c   : > { %v846_v49 = vmax.f32 %v745_v43, %v839_v16  ;;  %v1997_v50 = vpop.f32.mrb[5].mxu1 }
 0x23d   : > { %v842_v52 = vpop.f32.mrb[6].mxu1 }
 0x23e   : > { %v848_v54 = vsub.f32 %v745_v43, %v846_v49  ;;  %v854_v55 = vsub.f32 %v839_v16, %v846_v49  ;;  %v847_v56 = vmax.f32 %v748_v45, %v842_v52  ;;  %v1998_v57 = vpop.f32.mrb[7].mxu1 }
 0x240   : > { %v850_v18 = vmul.f32 1.442695, %v848_v54  ;;  %v856_v22 = vmul.f32 1.442695, %v854_v55  ;;  %v849_v58 = vsub.f32 %v748_v45, %v847_v56  ;;  %v855_v36 = vsub.f32 %v842_v52, %v847_v56 }
 0x242   : > { %2198 = vpow2.f32 %v850_v18  ;;  %v852_v39 = vmul.f32 1.442695, %v849_v58  ;;  %v858_v59 = vmul.f32 1.442695, %v855_v36 }
 0x243   : > { %2200 = vpow2.f32 %v856_v22  ;;  %v953_v61 = vpop.f32.mrb[8].mxu1 }
 0x244   : > { %2202 = vpow2.f32 %v852_v39  ;;  %v960_v62 = vmax.f32 %v846_v49, %v953_v61  ;;  %v2009_v63 = vpop.f32.mrb[9].mxu1 }
 0x245   : > { %2204 = vpow2.f32 %v858_v59  ;;  %v956_v3 = vpop.f32.mrb[10].mxu1 }
 0x246   : > { %v962_v5 = vsub.f32 %v846_v49, %v960_v62  ;;  %v968_v6 = vsub.f32 %v953_v61, %v960_v62  ;;  %v961_v8 = vmax.f32 %v847_v56, %v956_v3  ;;  %v2010_v11 = vpop.f32.mrb[11].mxu1 }
 0x248   : > { %v964_v12 = vmul.f32 1.442695, %v962_v5  ;;  %v970_v4 = vmul.f32 1.442695, %v968_v6  ;;  %v963_v15 = vsub.f32 %v847_v56, %v961_v8  ;;  %v969_v14 = vsub.f32 %v956_v3, %v961_v8 }
 0x24a   : > { %2206 = vpow2.f32 %v964_v12  ;;  %v966_v20 = vmul.f32 1.442695, %v963_v15  ;;  %v972_v23 = vmul.f32 1.442695, %v969_v14 }
 0x24b   : > { %2208 = vpow2.f32 %v970_v4  ;;  %v1069_v25 = vpop.f32.mrb[12].mxu1 }
 0x24c   : > { %v2199_v26 = vpop.eup %2198  ;;  %2210 = vpow2.f32 %v966_v20  ;;  %v1076_v28 = vmax.f32 %v960_v62, %v1069_v25  ;;  %v2021_v33 = vpop.f32.mrb[13].mxu1 }
 0x24d   : > { %v2201_v34 = vpop.eup %2200  ;;  %v862_v29 = vmul.f32 %v2199_v26, %v752_v19  ;;  %2212 = vpow2.f32 %v972_v23  ;;  %v1072_v35 = vpop.f32.mrb[14].mxu1 }
 0x24e   : > { %v2203_v38 = vpop.eup %2202  ;;  %v860_v1 = vadd.f32 %v2201_v34, %v2199_v26  ;;  %v864_v30 = vsel %vm2932_vm4, %v2201_v34, 0.0  ;;  %v1078_v41 = vsub.f32 %v960_v62, %v1076_v28  ;;  %v1084_v42 = vsub.f32 %v1069_v25, %v1076_v28  ;;  %v2022_v43 = vpop.f32.mrb[15].mxu1 }
 0x24f   : > { %v2205_v44 = vpop.eup %2204  ;;  %v866_v45 = vadd.f32 %v864_v30, %v862_v29  ;;  %v863_v46 = vmul.f32 %v2203_v38, %v753_v27  ;;  %v1077_v9 = vmax.f32 %v961_v8, %v1072_v35  ;;  %vm3327_vm4 = vnez %v3320_v17 }
 0x250   : > { %v861_v0 = vadd.f32 %v2205_v44, %v2203_v38  ;;  %v865_v16 = vsel %vm2947_vm6, %v2205_v44, 0.0  ;;  %v1080_v49 = vmul.f32 1.442695, %v1078_v41  ;;  %v1086_v50 = vmul.f32 1.442695, %v1084_v42 }
 0x251   : > { %v867_v52 = vadd.f32 %v865_v16, %v863_v46  ;;  %v1079_v54 = vsub.f32 %v961_v8, %v1077_v9  ;;  %v1085_v55 = vsub.f32 %v1072_v35, %v1077_v9  ;;  %vm3329_vm6 = vnez %v3324_v47 }
 0x252   : > { %2214 = vpow2.f32 %v1080_v49 }
 0x253   : > { %2216 = vpow2.f32 %v1086_v50  ;;  %v1082_v2 = vmul.f32 1.442695, %v1079_v54  ;;  %v1088_v56 = vmul.f32 1.442695, %v1085_v55  ;;  %v1185_v57 = vpop.f32.mrb[16].mxu1 }
 0x254   : > { %v2207_v18 = vpop.eup %2206  ;;  %v1192_v22 = vmax.f32 %v1076_v28, %v1185_v57  ;;  %v2033_v58 = vpop.f32.mrb[17].mxu1 }
 0x255   : > { %v2209_v36 = vpop.eup %2208  ;;  %v974_v39 = vmul.f32 %v2207_v18, %v860_v1  ;;  %v978_v59 = vmul.f32 %v2207_v18, %v866_v45  ;;  %2218 = vpow2.f32 %v1082_v2  ;;  %v1188_v61 = vpop.f32.mrb[18].mxu1 }
 0x256   : > { %v2211_v10 = vpop.eup %2210  ;;  %v980_v62 = vsel %vm2953_vm7, %v2209_v36, 0.0  ;;  %2220 = vpow2.f32 %v1088_v56  ;;  %v1194_v63 = vsub.f32 %v1076_v28, %v1192_v22  ;;  %v1200_v3 = vsub.f32 %v1185_v57, %v1192_v22  ;;  %v2034_v5 = vpop.f32.mrb[19].mxu1 }
 0x257   : > { %v2213_v6 = vpop.eup %2212  ;;  %v976_v8 = vadd.f32 %v2209_v36, %v974_v39  ;;  %v982_v11 = vadd.f32 %v980_v62, %v978_v59  ;;  %v975_v12 = vmul.f32 %v2211_v10, %v861_v0  ;;  %v979_v4 = vmul.f32 %v2211_v10, %v867_v52 }
 0x258   : > { %v981_v15 = vsel %vm2960_vm8, %v2213_v6, 0.0  ;;  %v1196_v14 = vmul.f32 1.442695, %v1194_v63  ;;  %v1202_v19 = vmul.f32 1.442695, %v1200_v3  ;;  %v1193_v20 = vmax.f32 %v1077_v9, %v1188_v61 }
 0x259   : > { %v977_v23 = vadd.f32 %v2213_v6, %v975_v12  ;;  %v983_v25 = vadd.f32 %v981_v15, %v979_v4 }
 0x25a   : > { %2222 = vpow2.f32 %v1196_v14  ;;  %v1195_v13 = vsub.f32 %v1077_v9, %v1193_v20  ;;  %v1201_v26 = vsub.f32 %v1188_v61, %v1193_v20 }
 0x25b   : > { %2224 = vpow2.f32 %v1202_v19  ;;  %v1301_v27 = vpop.f32.mrb[20].mxu1 }
 0x25c   : > { %v2215_v28 = vpop.eup %2214  ;;  %v1198_v33 = vmul.f32 1.442695, %v1195_v13  ;;  %v1204_v34 = vmul.f32 1.442695, %v1201_v26  ;;  %v1308_v29 = vmax.f32 %v1192_v22, %v1301_v27  ;;  %v2045_v35 = vpop.f32.mrb[21].mxu1 }
 0x25d   : > { %v2217_v38 = vpop.eup %2216  ;;  %v1090_v1 = vmul.f32 %v2215_v28, %v976_v8  ;;  %v1094_v30 = vmul.f32 %v2215_v28, %v982_v11  ;;  %v1304_v21 = vpop.f32.mrb[22].mxu1 }
 0x25e   : > { %v1096_v41 = vsel %vm2971_vm9, %v2217_v38, 0.0  ;;  %2226 = vpow2.f32 %v1198_v33  ;;  %v1310_v42 = vsub.f32 %v1192_v22, %v1308_v29  ;;  %v1316_v43 = vsub.f32 %v1301_v27, %v1308_v29  ;;  %v2046_v44 = vpop.f32.mrb[23].mxu1 }
 0x25f   : > { %v2219_v45 = vpop.eup %2218  ;;  %v1092_v46 = vadd.f32 %v2217_v38, %v1090_v1  ;;  %v1098_v9 = vadd.f32 %v1096_v41, %v1094_v30  ;;  %2228 = vpow2.f32 %v1204_v34  ;;  %v1309_v0 = vmax.f32 %v1193_v20, %v1304_v21 }
 0x260   : > { %v2221_v16 = vpop.eup %2220  ;;  %v1091_v49 = vmul.f32 %v2219_v45, %v977_v23  ;;  %v1095_v50 = vmul.f32 %v2219_v45, %v983_v25  ;;  %v1312_v52 = vmul.f32 1.442695, %v1310_v42  ;;  %v1318_v54 = vmul.f32 1.442695, %v1316_v43 }
 0x261   : > { %v1097_v55 = vsel %vm2976_vm10, %v2221_v16, 0.0  ;;  %v1311_v2 = vsub.f32 %v1193_v20, %v1309_v0  ;;  %v1317_v31 = vsub.f32 %v1304_v21, %v1309_v0 }
 0x262   : > { %v1093_v56 = vadd.f32 %v2221_v16, %v1091_v49  ;;  %v1099_v57 = vadd.f32 %v1097_v55, %v1095_v50  ;;  %2230 = vpow2.f32 %v1312_v52 }
 0x263   : > { %2232 = vpow2.f32 %v1318_v54  ;;  %v1314_v18 = vmul.f32 1.442695, %v1311_v2  ;;  %v1320_v22 = vmul.f32 1.442695, %v1317_v31  ;;  %v1417_v58 = vpop.f32.mrb[24].mxu1 }
 0x264   : > { %v2223_v36 = vpop.eup %2222  ;;  %v1424_v39 = vmax.f32 %v1308_v29, %v1417_v58  ;;  %v2057_v59 = vpop.f32.mrb[25].mxu1 }
 0x265   : > { %v2225_v61 = vpop.eup %2224  ;;  %v1206_v10 = vmul.f32 %v2223_v36, %v1092_v46  ;;  %v1210_v62 = vmul.f32 %v2223_v36, %v1098_v9  ;;  %2234 = vpow2.f32 %v1314_v18  ;;  %v1420_v63 = vpop.f32.mrb[26].mxu1 }
 0x266   : > { %v1212_v37 = vsel %vm2989_vm11, %v2225_v61, 0.0  ;;  %2236 = vpow2.f32 %v1320_v22  ;;  %v1426_v3 = vsub.f32 %v1308_v29, %v1424_v39  ;;  %v1432_v5 = vsub.f32 %v1417_v58, %v1424_v39  ;;  %v2058_v6 = vpop.f32.mrb[27].mxu1 }
 0x267   : > { %v1208_v8 = vadd.f32 %v2225_v61, %v1206_v10  ;;  %v1214_v11 = vadd.f32 %v1212_v37, %v1210_v62  ;;  %v1425_v12 = vmax.f32 %v1309_v0, %v1420_v63 }
 0x268   : > { %v2227_v4 = vpop.eup %2226  ;;  %v1428_v15 = vmul.f32 1.442695, %v1426_v3  ;;  %v1434_v14 = vmul.f32 1.442695, %v1432_v5 }
 0x269   : > { %v2229_v19 = vpop.eup %2228  ;;  %v1207_v20 = vmul.f32 %v2227_v4, %v1093_v56  ;;  %v1211_v23 = vmul.f32 %v2227_v4, %v1099_v57  ;;  %v1427_v25 = vsub.f32 %v1309_v0, %v1425_v12  ;;  %v1433_v13 = vsub.f32 %v1420_v63, %v1425_v12 }
 0x26a   : > { %v1213_v26 = vsel %vm2997_vm12, %v2229_v19, 0.0  ;;  %2238 = vpow2.f32 %v1428_v15 }
 0x26b   : > { %v1209_v48 = vadd.f32 %v2229_v19, %v1207_v20  ;;  %v1215_v27 = vadd.f32 %v1213_v26, %v1211_v23  ;;  %2240 = vpow2.f32 %v1434_v14  ;;  %v1430_v28 = vmul.f32 1.442695, %v1427_v25  ;;  %v1533_v33 = vpop.f32.mrb[28].mxu1 }
 0x26c   : > { %v2231_v34 = vpop.eup %2230  ;;  %v1436_v29 = vmul.f32 1.442695, %v1433_v13  ;;  %v1540_v35 = vmax.f32 %v1424_v39, %v1533_v33  ;;  %v2069_v38 = vpop.f32.mrb[29].mxu1 }
 0x26d   : > { %v2233_v1 = vpop.eup %2232  ;;  %v1322_v30 = vmul.f32 %v2231_v34, %v1208_v8  ;;  %v1326_v21 = vmul.f32 %v2231_v34, %v1214_v11  ;;  %2242 = vpow2.f32 %v1430_v28  ;;  %v1536_v41 = vpop.f32.mrb[30].mxu1 }
 0x26e   : > { %v1328_v42 = vsel %vm3007_vm13, %v2233_v1, 0.0  ;;  %2244 = vpow2.f32 %v1436_v29  ;;  %v1542_v32 = vsub.f32 %v1424_v39, %v1540_v35  ;;  %v1548_v43 = vsub.f32 %v1533_v33, %v1540_v35  ;;  %v2070_v44 = vpop.f32.mrb[31].mxu1 }
 0x26f   : > { %v2235_v45 = vpop.eup %2234  ;;  %v1324_v46 = vadd.f32 %v2233_v1, %v1322_v30  ;;  %v1330_v9 = vadd.f32 %v1328_v42, %v1326_v21  ;;  %v1541_v0 = vmax.f32 %v1425_v12, %v1536_v41 }
 0x270   : > { %v2237_v16 = vpop.eup %2236  ;;  %v1323_v49 = vmul.f32 %v2235_v45, %v1209_v48  ;;  %v1327_v50 = vmul.f32 %v2235_v45, %v1215_v27  ;;  %v1544_v52 = vmul.f32 1.442695, %v1542_v32  ;;  %v1550_v54 = vmul.f32 1.442695, %v1548_v43 }
 0x271   : > { %v1329_v55 = vsel %vm3014_vm14, %v2237_v16, 0.0  ;;  %v1543_v2 = vsub.f32 %v1425_v12, %v1541_v0  ;;  %v1549_v31 = vsub.f32 %v1536_v41, %v1541_v0  ;;  %v1616_v0 = vld [vmem:[%s3058_s23] sm:$0x1] }
 0x272   : > { %v1325_v60 = vadd.f32 %v2237_v16, %v1323_v49  ;;  %v1331_v56 = vadd.f32 %v1329_v55, %v1327_v50  ;;  %2246 = vpow2.f32 %v1544_v52 }
 0x273   : > { %2248 = vpow2.f32 %v1550_v54  ;;  %v1546_v57 = vmul.f32 1.442695, %v1543_v2  ;;  %v1552_v18 = vmul.f32 1.442695, %v1549_v31 }
 0x274   : > { %v2239_v22 = vpop.eup %2238 }
 0x275   : > { %v2241_v58 = vpop.eup %2240  ;;  %v1438_v36 = vmul.f32 %v2239_v22, %v1324_v46  ;;  %v1442_v39 = vmul.f32 %v2239_v22, %v1330_v9  ;;  %2250 = vpow2.f32 %v1546_v57 }
 0x276   : > { %v1444_v59 = vsel %vm3326_vm3, %v2241_v58, 0.0  ;;  %2252 = vpow2.f32 %v1552_v18 }
 0x277   : > { %v2243_v61 = vpop.eup %2242  ;;  %v1440_v7 = vadd.f32 %v2241_v58, %v1438_v36  ;;  %v1446_v10 = vadd.f32 %v1444_v59, %v1442_v39 }
 0x278   : > { %v2245_v62 = vpop.eup %2244  ;;  %v1439_v63 = vmul.f32 %v2243_v61, %v1325_v60  ;;  %v1443_v37 = vmul.f32 %v2243_v61, %v1331_v56 }
 0x279   : > { %v1445_v3 = vsel %vm3327_vm4, %v2245_v62, 0.0 }
 0x27a   : > { %v1441_v5 = vadd.f32 %v2245_v62, %v1439_v63  ;;  %v1447_v6 = vadd.f32 %v1445_v3, %v1443_v37 }
 0x27c   : > { %v2247_v8 = vpop.eup %2246 }
 0x27d   : > { %v2249_v11 = vpop.eup %2248  ;;  %v1554_v12 = vmul.f32 %v2247_v8, %v1440_v7  ;;  %v1558_v4 = vmul.f32 %v2247_v8, %v1446_v10 }
 0x27e   : > { %v1560_v24 = vsel %vm3328_vm5, %v2249_v11, 0.0 }
 0x27f   : > { %v2251_v15 = vpop.eup %2250  ;;  %v1556_v14 = vadd.f32 %v2249_v11, %v1554_v12  ;;  %v1562_v19 = vadd.f32 %v1560_v24, %v1558_v4 }
 0x280   : > { %v2253_v20 = vpop.eup %2252  ;;  %v1555_v23 = vmul.f32 %v2251_v15, %v1441_v5  ;;  %v1559_v25 = vmul.f32 %v2251_v15, %v1447_v6 }
 0x281   : > { %2254 = vlog2.f32 %v1556_v14  ;;  %v1568_v13 = vmax.f32 %v1562_v19, 1e-30  ;;  %v1561_v17 = vsel %vm3329_vm6, %v2253_v20, 0.0 }
 0x282   : > { %v1557_v26 = vadd.f32 %v2253_v20, %v1555_v23  ;;  %v1563_v48 = vadd.f32 %v1561_v17, %v1559_v25 }
 0x283   : > { %2256 = vlog2.f32 %v1568_v13 }
 0x284   : > { %2258 = vlog2.f32 %v1557_v26  ;;  %v1569_v27 = vmax.f32 %v1563_v48, 1e-30 }
 0x286   : > { %2260 = vlog2.f32 %v1569_v27 }
 0x28b   : > { %v2255_v28 = vpop.eup %2254 }
 0x28c   : > { %v1565_v34 = vmul.f32 0.6931472, %v2255_v28 }
 0x28d   : > { %v2257_v40 = vpop.eup %2256 }
 0x28e   : > { %v2259_v33 = vpop.eup %2258  ;;  %v1571_v29 = vmul.f32 0.6931472, %v2257_v40 }
 0x28f   : > { %v1567_v1 = vmul.f32 0.6931472, %v2259_v33 }
 0x290   : > { %v2261_v35 = vpop.eup %2260  ;;  %v1574_v38 = vsub.f32 %v1565_v34, %v1571_v29 }
 0x291   : > { %v1573_v30 = vmul.f32 0.6931472, %v2261_v35 }
 0x292   : > { %v1576_v47 = vsel %vm464_vm1, %v1574_v38, 0.0 }
 0x293   : > { %v1575_v21 = vsub.f32 %v1567_v1, %v1573_v30  ;;  %v1617_v42 = vsel %vm1587_vm2, %v1576_v47, 0.0 }
 0x295   : > { %v1577_v41 = vsel %vm465_vm0, %v1575_v21, 0.0 }
 0x296   : > { %v1618_v32 = vsel %vm1587_vm2, %v1577_v41, 0.0 }
 0x297   : > { %v1619_v43 = vadd.f32 %v1618_v32, %v1617_v42 }
 0x299   : > { %v1620_v44 = vrot.slane %v1619_v43, 4 }
 0x29b   : > { %v1621_v45 = vadd.f32 %v1620_v44, %v1619_v43 }
 0x29d   : > { %v1622_v46 = vrot.slane %v1621_v45, 2 }
 0x29f   : > { %v1623_v9 = vadd.f32 %v1622_v46, %v1621_v45 }
 0x2a1   : > { %v1624_v51 = vrot.slane %v1623_v9, 1 }
 0x2a3   : > { %v1625_v16 = vadd.f32 %v1624_v51, %v1623_v9 }
 0x2a5   : > { %v1626_v53 = vadd.f32 %v1625_v16, %v1616_v0 }
 0x2a7   : > { %1627 = vst.msk [vmem:[%s3058_s23] sm:$0x1] %vm1582_vm15, %v1626_v53 }
 0x2a8   : > { %2393 = shalt.err (!%p2390_p3)
}
 0x2a9   : > { %s2394_s30 = scalar_lea.hbm %s3162_s16, 16  ;;  %s2398_s29 = scalar_lea.hbm %s3255_s6, 32 }
 0x2aa   : > { %p2395_p5 = scmp.ne.s32.totalorder %s3162_s16, %s2394_s30  ;;  %p2399_p0 = scmp.lt.u32.totalorder %s3162_s16, %s3255_s6 }
 0x2ab   : > { %p2400_p8 = scmp.lt.u32.totalorder %s2398_s29, %s2394_s30  ;;  %p2402_p12 = scmp.lt.u32.totalorder %s2394_s30, %s3162_s16 }
 0x2ac   : > { %p2396_p2 = pnand %p2395_p5, %p3325_p6 }
 0x2ad   : > { %p2401_p9 = por %p2400_p8, %p2399_p0 }
 0x2ae   : > { %p2397_p1 = pneg %p2396_p2 }
 0x2af   : > { %p2403_p4 = por %p2402_p12, %p2401_p9 }
 0x2b1   : > { %p2404_p10 = pnand %p2403_p4, %p2397_p1 }
 0x2b3   : > { %2407 = shalt.err (!%p2404_p10)
}
 0x2b4   : > { %2078 = dma.vmem_to_hbm [thread:$0]  (%p3325_p6), %s3164_s21, 16, %s3162_s16, %s3178_s10  }
 0x2b5   : > { %s2408_s17 = scalar_lea.vmem %s3172_s22, 16  ;;  %s2509_s8 = smov [#allocation11]  }
 0x2b6   : > { %p2409_p13 = scmp.ne.s32.totalorder %s3172_s22, %s2408_s17  ;;  %s2412_s15 = sshll.u32 %s2509_s8, 4  ;;  %s2413_s15 = int_to_ptr.vmem [resolvable:$false] %s2412_s15 }
 0x2b7   : > { %s2414_s1 = scalar_lea.vmem %s2413_s15, 32  ;;  %p2415_p3 = scmp.lt.s32.totalorder %s3172_s22, %s2413_s15 }
 0x2b8   : > { %p2410_p11 = pnand %p2409_p13, %p3325_p6  ;;  %p2416_p5 = scmp.lt.s32.totalorder %s2414_s1, %s2408_s17 }
 0x2ba   : > { %p2411_p7 = pneg %p2410_p11  ;;  %p2417_p2 = por %p2416_p5, %p2415_p3 }
 0x2bc   : > { %p2418_p1 = pnand %p2417_p2, %p2411_p7 }
 0x2be   : > { %2421 = shalt.err (!%p2418_p1)
}
 0x2bf   : > { %s2422_s21 = scalar_lea.hbm %s3170_s12, 16  ;;  %s2426_s11 = scalar_lea.hbm %s3256_s7, 32 }
 0x2c0   : > { %p2423_p0 = scmp.ne.s32.totalorder %s3170_s12, %s2422_s21  ;;  %p2427_p12 = scmp.lt.u32.totalorder %s3170_s12, %s3256_s7 }
 0x2c1   : > { %p2428_p4 = scmp.lt.u32.totalorder %s2426_s11, %s2422_s21  ;;  %p2430_p13 = scmp.lt.u32.totalorder %s2422_s21, %s3170_s12 }
 0x2c2   : > { %p2424_p8 = pnand %p2423_p0, %p3325_p6 }
 0x2c3   : > { %p2429_p10 = por %p2428_p4, %p2427_p12 }
 0x2c4   : > { %p2425_p9 = pneg %p2424_p8 }
 0x2c5   : > { %p2431_p11 = por %p2430_p13, %p2429_p10 }
 0x2c7   : > { %p2432_p7 = pnand %p2431_p11, %p2425_p9 }
 0x2c9   : > { %2435 = shalt.err (!%p2432_p7)
}
 0x2ca   : > { %2079 = dma.vmem_to_hbm [thread:$0]  (%p3325_p6), %s3172_s22, 16, %s3170_s12, %s3178_s10  }
 0x2cb PF: > { %s3330_s0 = sld [smem:[#allocation20_spill]]  ;;  %s3331_s20 = sld [smem:[#allocation17_spill]] }
 0x2cc   : > { %s1690_s30 = sand.u32 1, %s2478_s24  }
 0x2cd   : > { %s1691_s18 = scalar_lea.sflag [#allocation4], %s1690_s30 }
 0x2d1   : > { %p3332_p3 = scmp.ne.s32.totalorder %s3330_s0, 0  ;;  %p3333_p5 = scmp.ge.s32.totalorder %s3331_s20, 2 }
 0x2d3   : > { %p2094_p2 = pnand %p3333_p5, %p3332_p3 }
 0x2d5   : > { %2469 = dma.done.wait (!%p2094_p2), %s1691_s18, 16  }
 0x2d6   : > { %2471 = vsyncadd (!%p2094_p2), %s1691_s18, 4294967280  ;;  %s3334_s23 = sadd.s32 4294967294, %s3331_s20  }
 0x2d7   : > { %s1698_s29 = sand.u32 1, %s3334_s23  }
 0x2d8   : > { %s1699_s26 = scalar_lea.sflag [#allocation10], %s1698_s29 }
 0x2d9   : > { %2473 = dma.done.wait (!%p2094_p2), %s1699_s26, 32  }
 0x2da   : > { %2475 = vsyncadd (!%p2094_p2), %s1699_s26, 4294967264  ;;  %s30_s29 = sadd.s32 1, %s3331_s20   ;;  %s3335_s14 = sld [smem:[#allocation16_spill]] }
 0x2db   : > { %p27_p6 = scmp.ge.s32.totalorder %s30_s29, 4   ;;  %s3336_s26 = sld [smem:[#allocation19_spill]] }
 0x2dc   : > { %s3337_s22 = sld [smem:[#allocation18_spill]]  ;;  %s3338_s24 = smov %s2482_s25 }
 0x2dd   : > { %s3340_s27 = smov %s2494_s28  ;;  %29 = sbr.rel (!%p27_p6) target bundleno = 13 (0xd), region = 162 }
 0x2e0   : > { %s3339_s25 = smov %s3335_s14 }
 0x2e2   : > { %s3341_s28 = smov %s3337_s22 }
 0x2e4   :  { %1711 = vsyncpa [#allocation3], 1 }
 0x2e5   :  { %1713 = vsyncpa [#allocation3 + $0x1], 1 }
 0x2e6   :  { %1714 = vsyncpa [#allocation6], 1 }
 0x2e7   :  { %1716 = vsyncpa [#allocation6 + $0x1], 1 }
 0x2e8   :  { %1717 = vsyncpa [#allocation4], 1 }
 0x2e9   :  { %1719 = vsyncpa [#allocation4 + $0x1], 1 }
 0x2ea   :  { %1720 = vsyncpa [#allocation10], 1 }
 0x2eb   :  { %1722 = vsyncpa [#allocation10 + $0x1], 1 }

</bundles_post_ra>
